<compile_context>
chip_gen: v7x
topology: tpu7x:2x2x1
jax: 0.10.0
libtpu: 0.0.40
codegen_flags: <defaults>
</compile_context>

<pallas_src>
import jax
import jax.numpy as jnp
from jax.experimental import pallas as pl
from jax.experimental.pallas import tpu as pltpu

MOBILENET_V2_LAST_CHANNEL = 1280   # mobilenet_v2 `last_channel`
HIDDEN = 128
NUM_BBOX = 4
LANE_PAD = 128                     # pad the 4-wide output layer to a full lane
POOL_CHUNK = 16                    # sublane chunk for f32 pool accumulation


def _round_up(x, m):
    return ((x + m - 1) // m) * m


def _vmem_capacity_bytes():
    """VMEM capacity of the local TPU (64 MiB/TC on v7x, 128 MiB on v5e/v6e)."""
    try:
        return int(pltpu.get_tpu_info().vmem_capacity_bytes)
    except Exception:
        return 128 << 20   # conservative default: v5e/v6e class


def _bbox_head_kernel(feat_ref, w1_ref, b1_ref, w2_ref, b2_ref, out_ref):
    """Fused global-avg-pool + Linear + ReLU + Linear + Sigmoid, one batch tile.

    feat_ref : [Bt, HW, C]   channels-last feature tile (bf16 or f32)
    w1_ref   : [C, 128]      first Linear weight, pre-scaled by 1/HW
    b1_ref   : [1, 128]
    w2_ref   : [128, 128]    second Linear weight, zero-padded to 128 lanes
    b2_ref   : [1, 128]
    out_ref  : [Bt, 128]     sigmoid outputs; only [:, :4] is meaningful

    NOTE on the tail tile (B not a multiple of Bt): out-of-range rows of the
    last block compute on padded/uninitialized data. This is benign because
    every output row depends only on its own input row and OOB output rows are
    dropped by the masked writeback — do NOT add any batch-wise mixing here.
    """
    bt, hw, c = feat_ref.shape
    chunk = min(POOL_CHUNK, hw)

    # Chunked spatial sum with an f32 accumulator. Avoids materializing a full
    # [Bt, HW, C] f32 copy of the tile (which would blow up the VMEM working
    # set at large Bt); the f32 live set stays at [Bt, C] + one chunk.
    acc = jnp.zeros((bt, c), jnp.float32)
    n_full = hw // chunk
    for s in range(n_full):
        blk = feat_ref[:, s * chunk:(s + 1) * chunk, :]
        acc = acc + jnp.sum(blk.astype(jnp.float32), axis=1)
    rem = hw - n_full * chunk
    if rem:
        blk = feat_ref[:, n_full * chunk:, :]
        acc = acc + jnp.sum(blk.astype(jnp.float32), axis=1)

    # Linear(1280 -> 128) + ReLU  (MXU; 1/HW mean scale folded into w1)
    h = jnp.dot(acc, w1_ref[...], preferred_element_type=jnp.float32)
    h = jnp.maximum(h + b1_ref[...], 0.0)

    # Linear(128 -> 4), padded to 128 lanes + Sigmoid  (lane-dense store)
    logits = jnp.dot(h, w2_ref[...], preferred_element_type=jnp.float32)
    logits = logits + b2_ref[...]
    out_ref[...] = jax.nn.sigmoid(logits).astype(out_ref.dtype)


def bbox_regressor_head(features, w1, b1, w2, b2, *, batch_tile=None):
    """BBox head on a channels-last backbone feature map.

    features : [B, H, W, C] with C = 1280 (bf16 recommended: halves HBM traffic)
    w1 : [C, HIDDEN]      b1 : [HIDDEN] or [1, HIDDEN]
    w2 : [HIDDEN, 4]      b2 : [4] or [1, 4]
    Returns [B, 4] f32 sigmoid bbox predictions (x_c, y_c, w, h).
    """
    B, H, W, C = features.shape
    HW = H * W
    # Collapsing contiguous H,W is free (no copy), unlike an NCHW->NHWC
    # transpose which would triple HBM traffic on the feature map.
    feat = features.reshape(B, HW, C)

    # Fold the 1/HW average-pool scale into w1 once (tiny one-time op).
    w1_s = w1.astype(jnp.float32) * (1.0 / HW)
    b1_r = b1.reshape(1, HIDDEN).astype(jnp.float32)

    # Pad the degenerate 4-wide output layer to a full 128-lane width so the
    # kernel's store is unmasked; slice [:, :4] afterwards in the wrapper.
    w2_p = jnp.zeros((HIDDEN, LANE_PAD), jnp.float32).at[:, :NUM_BBOX].set(
        w2.astype(jnp.float32))
    b2_p = jnp.zeros((1, LANE_PAD), jnp.float32).at[:, :NUM_BBOX].set(
        b2.reshape(1, NUM_BBOX).astype(jnp.float32))

    vmem_cap = _vmem_capacity_bytes()

    # Batch-tile selection: big tiles amortize the ~0.35 us per-grid-step
    # overhead behind long contiguous feature DMAs; 64 on v7x (64 MiB VMEM/TC),
    # 128 on v5e/v6e (128 MiB VMEM). Always keep >= 2 grid blocks when B allows
    # it so both of v7x's TensorCores get work (grid axis is "parallel").
    if batch_tile is None:
        batch_tile = 64 if vmem_cap <= (64 << 20) else 128
    bt = min(batch_tile, _round_up(B, 8))
    if B > 8:
        bt = min(bt, _round_up(pl.cdiv(B, 2), 8))
    bt = max(8, _round_up(bt, 8))
    num_blocks = pl.cdiv(B, bt)   # tail tile: OOB rows padded on read, masked on write

    # VMEM budget: double-buffered feature tile (including sublane padding of
    # the HW axis: (8,128) f32 / (16,128) bf16 tiles), resident weights, output
    # blocks, pool scratch, plus headroom. Clamp per chip generation.
    itemsize = jnp.dtype(feat.dtype).itemsize
    sub_tile = 8 * max(1, 4 // itemsize)              # 8 (f32) / 16 (bf16)
    hw_padded = _round_up(HW, sub_tile)
    feat_block_bytes = bt * hw_padded * C * itemsize
    const_bytes = (C * HIDDEN + HIDDEN * LANE_PAD) * 4 + 2 * (8 * LANE_PAD * 4)
    out_block_bytes = bt * LANE_PAD * 4
    pool_scratch = bt * C * 4 + bt * min(POOL_CHUNK, HW) * C * 4
    clamp = (40 << 20) if vmem_cap <= (64 << 20) else (96 << 20)
    vmem_limit = int(min(
        max(2 * feat_block_bytes + 2 * const_bytes + 2 * out_block_bytes
            + pool_scratch + (8 << 20), 16 << 20),
        clamp))

    cost = pl.CostEstimate(
        flops=2 * B * C * HIDDEN + 2 * B * HIDDEN * NUM_BBOX + B * HW * C,
        transcendentals=B * NUM_BBOX,
        bytes_accessed=(feat.size * feat.dtype.itemsize
                        + const_bytes + B * NUM_BBOX * 4),
    )

    out_padded = pl.pallas_call(
        _bbox_head_kernel,
        out_shape=jax.ShapeDtypeStruct((B, LANE_PAD), jnp.float32),
        grid=(num_blocks,),
        in_specs=[
            pl.BlockSpec((bt, HW, C), lambda i: (i, 0, 0)),
            pl.BlockSpec((C, HIDDEN), lambda i: (0, 0)),
            pl.BlockSpec((1, HIDDEN), lambda i: (0, 0)),
            pl.BlockSpec((HIDDEN, LANE_PAD), lambda i: (0, 0)),
            pl.BlockSpec((1, LANE_PAD), lambda i: (0, 0)),
        ],
        out_specs=pl.BlockSpec((bt, LANE_PAD), lambda i: (i, 0)),
        compiler_params=pltpu.CompilerParams(
            dimension_semantics=("parallel",),
            vmem_limit_bytes=vmem_limit,
        ),
        cost_estimate=cost,
    )(feat, w1_s, b1_r, w2_p, b2_p)

    return out_padded[:, :NUM_BBOX]


def _reference(features_nhwc, w1, b1, w2, b2):
    """Pure-JAX reference for correctness checking."""
    pooled = jnp.mean(features_nhwc.astype(jnp.float32), axis=(1, 2))
    h = jnp.maximum(pooled @ w1 + b1.reshape(1, -1), 0.0)
    return jax.nn.sigmoid(h @ w2 + b2.reshape(1, -1))


if __name__ == "__main__":
    key = jax.random.PRNGKey(0)
    k_feat, k_w1, k_w2 = jax.random.split(key, 3)

    # Small backbone-output-shaped feature map, channels-last, bf16 (as the
    # backbone would emit it on TPU). B=12 exercises multiple batch tiles
    # including a partial tail tile.
    B, H, W, C = 12, 4, 4, MOBILENET_V2_LAST_CHANNEL
    features = jax.random.normal(
        k_feat, (B, H, W, C), dtype=jnp.float32).astype(jnp.bfloat16)

    # bbox_head parameters, deterministic synthetic init (no checkpoint load)
    w1 = jax.random.normal(k_w1, (C, HIDDEN), dtype=jnp.float32) * 0.02
    b1 = jnp.zeros((HIDDEN,), dtype=jnp.float32)
    w2 = jax.random.normal(k_w2, (HIDDEN, NUM_BBOX), dtype=jnp.float32) * 0.02
    b2 = jnp.zeros((NUM_BBOX,), dtype=jnp.float32)

    out = jax.block_until_ready(bbox_regressor_head(features, w1, b1, w2, b2))
    ref = jax.block_until_ready(_reference(features, w1, b1, w2, b2))

    assert out.shape == (B, NUM_BBOX)
    assert jnp.allclose(out, ref, atol=3e-5, rtol=3e-5), "mismatch vs reference"

    print("KERNEL_OK")
</pallas_src>

<mosaic_0001>
module attributes {stable_mosaic.version = 11 : i64} {
  func.func @_bbox_head_kernel(%arg0: i32, %arg1: memref<8x16x1280xbf16, #tpu.memory_space<vmem>>, %arg2: memref<1280x128xf32, #tpu.memory_space<vmem>>, %arg3: memref<1x128xf32, #tpu.memory_space<vmem>>, %arg4: memref<128x128xf32, #tpu.memory_space<vmem>>, %arg5: memref<1x128xf32, #tpu.memory_space<vmem>>, %arg6: memref<8x128xf32, #tpu.memory_space<vmem>>) attributes {dimension_semantics = [#tpu.dimension_semantics<parallel>], iteration_bounds = array<i64: 2>, scalar_prefetch = 0 : i64, scratch_operands = 0 : i64, tpu.core_type = #tpu.core_type<tc>, window_params = [{transform_indices = @transform_0, window_bounds = array<i64: 8, 16, 1280>}, {pipeline_mode = #tpu.pipeline_mode<synchronous>, transform_indices = @transform_1, window_bounds = array<i64: 1280, 128>}, {pipeline_mode = #tpu.pipeline_mode<synchronous>, transform_indices = @transform_2, window_bounds = array<i64: 1, 128>}, {pipeline_mode = #tpu.pipeline_mode<synchronous>, transform_indices = @transform_3, window_bounds = array<i64: 128, 128>}, {pipeline_mode = #tpu.pipeline_mode<synchronous>, transform_indices = @transform_4, window_bounds = array<i64: 1, 128>}, {transform_indices = @transform_5, window_bounds = array<i64: 8, 128>}]} {
    %cst = arith.constant 0.000000e+00 : f32
    %0 = vector.broadcast %cst : f32 to vector<8x1280xf32>
    %c0 = arith.constant 0 : index
    %c0_0 = arith.constant 0 : index
    %c0_1 = arith.constant 0 : index
    %1 = vector.load %arg1[%c0, %c0_0, %c0_1] : memref<8x16x1280xbf16, #tpu.memory_space<vmem>>, vector<8x16x1280xbf16>
    %2 = arith.extf %1 : vector<8x16x1280xbf16> to vector<8x16x1280xf32>
    %cst_2 = arith.constant dense<0.000000e+00> : vector<8x1280xf32>
    %3 = vector.multi_reduction <add>, %2, %cst_2 [1] : vector<8x16x1280xf32> to vector<8x1280xf32>
    %4 = arith.addf %0, %3 : vector<8x1280xf32>
    %c0_3 = arith.constant 0 : index
    %c0_4 = arith.constant 0 : index
    %5 = vector.load %arg2[%c0_3, %c0_4] : memref<1280x128xf32, #tpu.memory_space<vmem>>, vector<1280x128xf32>
    %cst_5 = arith.constant dense<0.000000e+00> : vector<8x128xf32>
    %6 = tpu.matmul %4, %5, %cst_5 {dimension_numbers = #tpu.dot_dimension_numbers<[1], [0], [0], [1], [0, 0, 1, 1], [], []>} : vector<8x1280xf32>, vector<1280x128xf32>, vector<8x128xf32> -> vector<8x128xf32>
    %c0_6 = arith.constant 0 : index
    %c0_7 = arith.constant 0 : index
    %7 = vector.load %arg3[%c0_6, %c0_7] : memref<1x128xf32, #tpu.memory_space<vmem>>, vector<1x128xf32>
    %8 = vector.broadcast %7 : vector<1x128xf32> to vector<8x128xf32>
    %9 = arith.addf %6, %8 : vector<8x128xf32>
    %cst_8 = arith.constant 0.000000e+00 : f32
    %10 = vector.broadcast %cst_8 : f32 to vector<8x128xf32>
    %11 = arith.maximumf %9, %10 : vector<8x128xf32>
    %c0_9 = arith.constant 0 : index
    %c0_10 = arith.constant 0 : index
    %12 = vector.load %arg4[%c0_9, %c0_10] : memref<128x128xf32, #tpu.memory_space<vmem>>, vector<128x128xf32>
    %cst_11 = arith.constant dense<0.000000e+00> : vector<8x128xf32>
    %13 = tpu.matmul %11, %12, %cst_11 {dimension_numbers = #tpu.dot_dimension_numbers<[1], [0], [0], [1], [0, 0, 1, 1], [], []>} : vector<8x128xf32>, vector<128x128xf32>, vector<8x128xf32> -> vector<8x128xf32>
    %c0_12 = arith.constant 0 : index
    %c0_13 = arith.constant 0 : index
    %14 = vector.load %arg5[%c0_12, %c0_13] : memref<1x128xf32, #tpu.memory_space<vmem>>, vector<1x128xf32>
    %15 = vector.broadcast %14 : vector<1x128xf32> to vector<8x128xf32>
    %16 = arith.addf %13, %15 : vector<8x128xf32>
    %17 = arith.negf %16 : vector<8x128xf32>
    %18 = math.exp %17 : vector<8x128xf32>
    %cst_14 = arith.constant 1.000000e+00 : f32
    %19 = vector.broadcast %cst_14 : f32 to vector<8x128xf32>
    %20 = arith.addf %19, %18 : vector<8x128xf32>
    %21 = arith.divf %19, %20 : vector<8x128xf32>
    %c0_15 = arith.constant 0 : index
    %c0_16 = arith.constant 0 : index
    %22 = vector.load %arg6[%c0_15, %c0_16] : memref<8x128xf32, #tpu.memory_space<vmem>>, vector<8x128xf32>
    tpu.vector_store %arg6[%c0_15, %c0_16], %21 {strides = array<i32>} : memref<8x128xf32, #tpu.memory_space<vmem>>, vector<8x128xf32>,
    return
  }
  func.func @transform_0(%arg0: i32) -> (i32, i32, i32) {
    %c0_i32 = arith.constant 0 : i32
    %c0_i32_0 = arith.constant 0 : i32
    %c0_i32_1 = arith.constant 0 : i32
    return %arg0, %c0_i32, %c0_i32_0 : i32, i32, i32
  }
  func.func @transform_1(%arg0: i32) -> (i32, i32) {
    %c0_i32 = arith.constant 0 : i32
    %c0_i32_0 = arith.constant 0 : i32
    %c0_i32_1 = arith.constant 0 : i32
    return %c0_i32, %c0_i32_0 : i32, i32
  }
  func.func @transform_2(%arg0: i32) -> (i32, i32) {
    %c0_i32 = arith.constant 0 : i32
    %c0_i32_0 = arith.constant 0 : i32
    %c0_i32_1 = arith.constant 0 : i32
    return %c0_i32, %c0_i32_0 : i32, i32
  }
  func.func @transform_3(%arg0: i32) -> (i32, i32) {
    %c0_i32 = arith.constant 0 : i32
    %c0_i32_0 = arith.constant 0 : i32
    %c0_i32_1 = arith.constant 0 : i32
    return %c0_i32, %c0_i32_0 : i32, i32
  }
  func.func @transform_4(%arg0: i32) -> (i32, i32) {
    %c0_i32 = arith.constant 0 : i32
    %c0_i32_0 = arith.constant 0 : i32
    %c0_i32_1 = arith.constant 0 : i32
    return %c0_i32, %c0_i32_0 : i32, i32
  }
  func.func @transform_5(%arg0: i32) -> (i32, i32) {
    %c0_i32 = arith.constant 0 : i32
    %c0_i32_0 = arith.constant 0 : i32
    return %arg0, %c0_i32 : i32, i32
  }
}

</mosaic_0001>

<bundles_post_ra>
// kernel: tpu_custom_call.1
= control target key start
LH: loop header
LB: loop body
LE: loop exit
PB: predicated region body
PF: predicated region fallthrough
CT: control target
= control target key end

     0   :  { %10 = vsyncpa [#allocation3], 0  ;;  %s3849_s0 = inlined_call_operand.hbm [shape: bf16[12,16,1280], index: 0, kind: input, shape index: {}]   ;;  %s3850_s1 = inlined_call_operand.hbm [shape: f32[1280,128], index: 1, kind: input, shape index: {}]   ;;  %s3851_s2 = inlined_call_operand.vmem [shape: f32[1,128], index: 2, kind: input, shape index: {}]   ;;  %s3852_s3 = inlined_call_operand.hbm [shape: f32[128,128], index: 3, kind: input, shape index: {}]   ;;  %s3853_s4 = inlined_call_operand.vmem [shape: f32[1,128], index: 4, kind: input, shape index: {}]   ;;  %s3854_s5 = inlined_call_operand.hbm [shape: f32[12,128], index: 5, kind: output, shape index: {}]  }
   0x1   :  { %12 = vsyncpa [#allocation3 + $0x1], 0 }
   0x2   :  { %13 = vsyncpa [#allocation6], 0 }
   0x3   :  { %14 = vsyncpa [#allocation4], 0 }
   0x4   :  { %16 = vsyncpa [#allocation4 + $0x1], 0  ;;  %s2767_s18 = smov 0   ;;  %s2769_s19 = smov 0  }
   0x5   :  { %s2771_s20 = smov 0   ;;  %s2773_s21 = smov 0  }
   0x6 LB: > { %s2788_s22 = sadd.s32 4294967295, %s2724_s21   ;;  %s2057_s23 = sadd.s32 4294967294, %s2724_s21   ;;  %s2724_s21 = sphi %s2773_s21, %s3960_s21   ;;  %s2720_s20 = sphi %s2771_s20, %s3959_s20   ;;  %s2716_s19 = sphi %s2769_s19, %s3958_s19   ;;  %s2712_s18 = sphi %s2767_s18, %s3957_s18  }
   0x7   : > { %s2792_s24 = sadd.s32 1, %s2724_s21   ;;  %s29_s25 = sadd.s32 1, %s2720_s20 }
   0x8   : > { %s26_s26 = ssub.s32 %s2724_s21, %s2792_s24  ;;  %p36_p0 = scmp.ne.s32.totalorder %s2720_s20, %s2716_s19 }
   0x9   : > { %p27_p1 = scmp.eq.s32.totalorder %s26_s26, 0  ;;  %p37_p2 = scmp.eq.s32.totalorder %s2724_s21, 0 }
   0xa   : > { %p42_p3 = scmp.ne.s32.totalorder %s2716_s19, %s2712_s18  ;;  %p3855_p4 = scmp.eq.s32.totalorder %s2788_s22, 0 }
   0xb   : > { %s2804_s27 = scalar_select %p27_p1, %s2720_s20, %s29_s25  }
   0xc   : > { %p2806_p5 = por %p37_p2, %p36_p0  ;;  %p2812_p6 = por %p3855_p4, %p42_p3 }
   0xd   : > { %3878 = sst [smem:[#allocation12_spill]] %s2804_s27  ;;  %p150_p7 = scmp.eq.s32.totalorder %s2788_s22, 1 }
   0xe   : > { %s3879_s28 = scalar_select %p2806_p5, 1, 0 }
   0xf   : > { %s3880_s29 = scalar_select %p2812_p6, 1, 0 }
  0x10   : > { %p156_p8 = scmp.eq.s32.totalorder %s2057_s23, 1  ;;  %p2058_p9 = scmp.ge.s32.totalorder %s2724_s21, 1 }
  0x11   : > { %p163_p10 = scmp.lt.s32.totalorder %s2724_s21, 3  ;;  %p2819_p11 = por %p150_p7, %p36_p0 }
  0x12   : > { %p2823_p12 = por %p156_p8, %p42_p3  ;;  %s2726_s8 = smov [#allocation5]  }
  0x13   : > { %s3881_s30 = scalar_select %p2819_p11, 1, 0 }
  0x14   : > { %s3882_s6 = scalar_select %p2823_p12, 1, 0 }
  0x15   : > { %p2827_p13 = pnand %p2058_p9, %p163_p10  ;;  %s175_s9 = sshll.u32 %s2726_s8, 4  ;;  %s176_s9 = int_to_ptr.vmem [resolvable:$true] %s175_s9 }
  0x16   : > { %s2727_s11 = smov [#allocation7]   ;;  %s2570_s15 = scalar_lea.hbm %s3850_s1, 20480 }
  0x17   : > { %s3883_s7 = scalar_select %p2827_p13, 1, 0 }
  0x18   : > { %p2509_p1 = pneg %p2827_p13  ;;  %s191_s12 = sshll.u32 %s2727_s11, 4  ;;  %s2839_s12 = int_to_ptr.vmem [resolvable:$true] %s191_s12 }
  0x19   : > { %p2571_p0 = scmp.ne.s32.totalorder %s3850_s1, %s2570_s15  ;;  %p2577_p9 = scmp.lt.u32.totalorder %s2570_s15, %s3850_s1 }
  0x1a   : > { %p2835_p2 = pnand %p2509_p1, %p3855_p4 }
  0x1c   : > { %p2572_p3 = pneg %p2835_p2 }
  0x1e   : > { %p2573_p7 = pnand %p2572_p3, %p2571_p0 }
  0x20   : > { %p2574_p8 = pneg %p2573_p7 }
  0x22   : > { %p2579_p10 = pnand %p2577_p9, %p2574_p8 }
  0x24   : > { %2582 = shalt.err (!%p2579_p10)
}
  0x25   : > { %s2583_s26 = scalar_lea.vmem %s176_s9, 20480  ;;  %p2591_p11 = scmp.lt.s32.totalorder %s176_s9, %s176_s9 }
  0x26   : > { %p2584_p1 = scmp.ne.s32.totalorder %s176_s9, %s2583_s26  ;;  %p2592_p6 = scmp.lt.s32.totalorder %s2583_s26, %s2583_s26 }
  0x28   : > { %p2586_p4 = pnand %p2584_p1, %p2572_p3  ;;  %p2593_p13 = por %p2592_p6, %p2591_p11 }
  0x2a   : > { %p2587_p12 = pneg %p2586_p4 }
  0x2c   : > { %p2594_p5 = pnand %p2593_p13, %p2587_p12 }
  0x2e   : > { %2597 = shalt.err (!%p2594_p5)
}
  0x2f   : > { %s2728_s8 = smov 128   ;;  %s2729_s11 = smov 8  }
  0x30   : > { %2512 = dma.hbm_to_vmem [thread:$0]  (!%p2835_p2), %s3850_s1, 20480, %s176_s9, [#allocation6], %s2728_s8, %s2728_s8, %s2729_s11  }
  0x31   : > { %s2598_s17 = scalar_lea.hbm %s3852_s3, 2048 }
  0x32   : > { %p2599_p4 = scmp.ne.s32.totalorder %s3852_s3, %s2598_s17  ;;  %p2605_p11 = scmp.lt.u32.totalorder %s2598_s17, %s3852_s3 }
  0x34   : > { %p2601_p5 = pnand %p2599_p4, %p2572_p3 }
  0x36   : > { %p2602_p6 = pneg %p2601_p5 }
  0x38   : > { %p2607_p12 = pnand %p2605_p11, %p2602_p6 }
  0x3a   : > { %2610 = shalt.err (!%p2607_p12)
}
  0x3b   : > { %s2611_s9 = scalar_lea.vmem %s2839_s12, 2048  ;;  %p2619_p8 = scmp.lt.s32.totalorder %s2839_s12, %s2839_s12 }
  0x3c   : > { %p2612_p13 = scmp.ne.s32.totalorder %s2839_s12, %s2611_s9  ;;  %p2620_p9 = scmp.lt.s32.totalorder %s2611_s9, %s2611_s9 }
  0x3e   : > { %p2614_p0 = pnand %p2612_p13, %p2572_p3  ;;  %p2621_p10 = por %p2620_p9, %p2619_p8 }
  0x40   : > { %p2615_p7 = pneg %p2614_p0 }
  0x42   : > { %p2622_p1 = pnand %p2621_p10, %p2615_p7 }
  0x44   : > { %2625 = shalt.err (!%p2622_p1)
}
  0x45   : > { %2515 = dma.hbm_to_vmem [thread:$0]  (!%p2835_p2), %s3852_s3, 2048, %s2839_s12, [#allocation6], %s2728_s8, %s2728_s8, %s2729_s11  }
  0x46   : > { %p2061_p4 = scmp.ge.s32.totalorder %s2724_s21, 2 }
  0x47   : > { %p3885_p3 = scmp.ne.s32.totalorder (!%p2061_p4), %s3879_s28, 0 }
  0x48   : > { %204 = sbr.rel (%p2061_p4) target bundleno = 115 (0x73), region = 32 }
  0x4f   : > { %207 = sbr.rel (!%p3885_p3) target bundleno = 115 (0x73), region = 36  ;;  %s208_s14 = sand.u32 (%p3885_p3), 1, %s2720_s20  }
  0x50   : > { %s2062_s15 = sshll.u32 (%p3885_p3), %s2724_s21, 3  ;;  %s2495_s16 = smul.u32 (%p3885_p3), 640, %s208_s14 }
  0x51   : > { %s214_s17 = ssub.s32 (%p3885_p3), 12, %s2062_s15  ;;  %s2898_s8 = scalar_lea.sflag (%p3885_p3), [#allocation3], %s208_s14 }
  0x52   : > { %p215_p5 = scmp.lt.s32.totalorder (%p3885_p3), %s214_s17, 8  ;;  %s212_s11 = scalar_lea.vmem (%p3885_p3), [#allocation2], %s2495_s16 }
  0x56   : > { %s3962_s17 = smov (!%p215_p5, %s214_s17), 8 }
  0x57   : > { %s2895_s10 = smul.u32 1280, %s3962_s17 }
  0x59   : > { %s221_s12 = ssub.s32 10240, %s2895_s10 }
  0x5a   : > { %222 = vsyncadd %s2898_s8, %s221_s12  ;;  %p2066_p2 = scmp.ne.s32.totalorder %s2895_s10, 0  ;;  %s2496_s28 = smul.u32 10240, %s2724_s21 }
  0x5b   : > { %s229_s23 = sshll.u32 %s212_s11, 4  ;;  %s2630_s15 = scalar_lea.hbm %s3849_s0, 15360  ;;  %s2908_s23 = int_to_ptr.vmem [resolvable:$true] %s229_s23 }
  0x5c   : > { %s2906_s9 = scalar_lea.hbm %s3849_s0, %s2496_s28 }
  0x5d   : > { %s2626_s27 = scalar_lea.hbm %s2906_s9, %s2895_s10  ;;  %p2631_p13 = scmp.lt.u32.totalorder %s2906_s9, %s3849_s0 }
  0x5e   : > { %p2627_p6 = scmp.ne.s32.totalorder %s2906_s9, %s2626_s27  ;;  %p2632_p0 = scmp.lt.u32.totalorder %s2630_s15, %s2626_s27 }
  0x5f   : > { %p2634_p8 = scmp.lt.u32.totalorder %s2626_s27, %s2906_s9 }
  0x60   : > { %p2628_p11 = pnand %p2627_p6, %p2066_p2  ;;  %p2633_p7 = por %p2632_p0, %p2631_p13 }
  0x62   : > { %p2629_p12 = pneg %p2628_p11  ;;  %p2635_p9 = por %p2634_p8, %p2633_p7 }
  0x64   : > { %p2636_p10 = pnand %p2635_p9, %p2629_p12 }
  0x66   : > { %2639 = shalt.err (!%p2636_p10)
}
  0x67   : > { %s2640_s12 = scalar_lea.vmem %s2908_s23, %s2895_s10  ;;  %s2730_s11 = smov [#allocation2]  }
  0x68   : > { %p2641_p1 = scmp.ne.s32.totalorder %s2908_s23, %s2640_s12  ;;  %s2644_s28 = sshll.u32 %s2730_s11, 4  ;;  %s2645_s28 = int_to_ptr.vmem [resolvable:$false] %s2644_s28 }
  0x69   : > { %s2646_s25 = scalar_lea.vmem %s2645_s28, 20480  ;;  %p2647_p6 = scmp.lt.s32.totalorder %s2908_s23, %s2645_s28 }
  0x6a   : > { %p2642_p3 = pnand %p2641_p1, %p2066_p2  ;;  %p2648_p11 = scmp.lt.s32.totalorder %s2646_s25, %s2640_s12 }
  0x6c   : > { %p2643_p5 = pneg %p2642_p3  ;;  %p2649_p13 = por %p2648_p11, %p2647_p6 }
  0x6e   : > { %p2650_p0 = pnand %p2649_p13, %p2643_p5 }
  0x70   : > { %2653 = shalt.err (!%p2650_p0)
}
  0x71   : > { %s2731_s26 = smov 640   ;;  %s2732_s27 = smov 40  }
  0x72   : > { %235 = dma.hbm_to_vmem [thread:$0]  (%p2066_p2), %s2906_s9, %s2895_s10, %s2908_s23, %s2898_s8, %s2731_s26, %s2731_s26, %s2732_s27  }
  0x73 PF: > { %p3886_p12 = scmp.ne.s32.totalorder %s3883_s7, 0 }
  0x75   : > { %241 = sbr.rel (%p3886_p12) target bundleno = 845 (0x34d), region = 40 }
  0x7c   : > { %s2938_s13 = sand.u32 1, %s2716_s19   ;;  %p3887_p7 = scmp.ne.s32.totalorder %s3880_s29, 0 }
  0x7d   : > { %s2497_s14 = smul.u32 640, %s2938_s13  ;;  %s244_s15 = scalar_lea.sflag [#allocation3], %s2938_s13 }
  0x7f   : > { %s2942_s16 = scalar_lea.vmem [#allocation2], %s2497_s14 }
  0x80   : > { %2699 = dma.done.wait (%p3887_p7), %s244_s15, 10240  }
  0x81   : > { %2701 = vsyncadd (%p3887_p7), %s244_s15, 4294957056  ;;  %p3888_p2 = scmp.eq.s32.totalorder %s2788_s22, 0 }
  0x83   : > { %2703 = dma.done.wait (%p3888_p2), [#allocation6], 22528   ;;  %p3889_p8 = pmov %p3888_p2 }
  0x84   : > { %v1185_v0 = vld [vmem:[#allocation5 + $0x80] sm:$0xff]  ;;  %v1186_v1 = vld [vmem:[#allocation5 + $0x88] sm:$0xff]  ;;  %v1187_v11 = vld [vmem:[#allocation5 + $0x90] sm:$0xff]  ;;  %vm1416_vm0 = vcmask 1041409   ;;  %vm1418_vm1 = vcmask 1042434   ;;  %vm1420_vm2 = vcmask 1043459  }
  0x85   : > { %2705 = vsyncadd (%p3889_p8), [#allocation6], 4294944768  ;;  %v1169_v2 = vld [vmem:[#allocation5] sm:$0xff]  ;;  %v2311_v3 = vpack.c.bf16 %v1186_v1, %v1185_v0  ;;  %v1170_v4 = vld [vmem:[#allocation5 + $0x8] sm:$0xff]  ;;  %vm1422_vm3 = vcmask 1044484   ;;  %vm1424_vm4 = vcmask 1045509  }
  0x86   : > { %v1217_v5 = vld [vmem:[#allocation5 + $0x180] sm:$0xff]  ;;  %v1218_v6 = vld [vmem:[#allocation5 + $0x188] sm:$0xff]  ;;  %v2313_v7 = vpack.c.bf16 %v1170_v4, %v1169_v2  ;;  %v1188_v13 = vld [vmem:[#allocation5 + $0x98] sm:$0xff]  ;;  %vm1426_vm5 = vcmask 1046534   ;;  %vm1428_vm6 = vcmask 1047559   ;;  %vm2734_vm7 = vmmov 0  }
  0x87   : > { %v2343_v8 = vpack.c.bf16 %v1218_v6, %v1217_v5  ;;  %v1201_v9 = vld [vmem:[#allocation5 + $0x100] sm:$0xff]  ;;  %v1202_v10 = vld [vmem:[#allocation5 + $0x108] sm:$0xff]  ;;  %2312 = vmatprep.subr.bf16.mxu0 %v2311_v3  ;;  %v1171_v14 = vld [vmem:[#allocation5 + $0x10] sm:$0xff]  ;;  %v2315_v16 = vpack.c.bf16 %v1188_v13, %v1187_v11  ;;  %s2075_s23 = sshll.u32 %s2938_s13, 3  ;;  %s2080_s9 = sshll.u32 %s2788_s22, 7 }
  0x88   : > { %v2345_v12 = vpack.c.bf16 %v1202_v10, %v1201_v9  ;;  %v1172_v15 = vld [vmem:[#allocation5 + $0x18] sm:$0xff]  ;;  %2314 = vmatpush3.bf16.msra.mxu0 %v2313_v7  ;;  %v1219_v18 = vld [vmem:[#allocation5 + $0x190] sm:$0xff]  ;;  %v1189_v23 = vld [vmem:[#allocation5 + $0xa0] sm:$0xff]  ;;  %s281_s17 = scalar_lea.vmem [#allocation8], %s2075_s23  ;;  %s3805_s25 = scalar_lea.hbm %s3854_s5, %s2080_s9 }
  0x89   : > { %2344 = vmatprep.subr.bf16.mxu1 %v2343_v8  ;;  %v2317_v17 = vpack.c.bf16 %v1172_v15, %v1171_v14  ;;  %v1220_v19 = vld [vmem:[#allocation5 + $0x198] sm:$0xff]  ;;  %v1203_v20 = vld [vmem:[#allocation5 + $0x110] sm:$0xff]  ;;  %v1190_v24 = vld [vmem:[#allocation5 + $0xa8] sm:$0xff]  ;;  %2316 = vmatprep.subr.bf16.mxu0 %v2315_v16  ;;  %s1968_s12 = sshll.u32 %s281_s17, 4  ;;  %s1955_s26 = scalar_lea.sflag [#allocation4], %s2938_s13  ;;  %s3807_s12 = int_to_ptr.vmem [resolvable:$true] %s1968_s12 }
  0x8a   : > { %2346 = vmatpush3.bf16.msra.mxu1 %v2345_v12  ;;  %v2347_v21 = vpack.c.bf16 %v1220_v19, %v1219_v18  ;;  %v1204_v22 = vld [vmem:[#allocation5 + $0x118] sm:$0xff]  ;;  %v2319_v26 = vpack.c.bf16 %v1190_v24, %v1189_v23  ;;  %v1173_v27 = vld [vmem:[#allocation5 + $0x20] sm:$0xff]  ;;  %v1174_v28 = vld [vmem:[#allocation5 + $0x28] sm:$0xff]  ;;  %s2654_s27 = scalar_lea.vmem %s3807_s12, 128  ;;  %p3954_p10 = scmp.ne.s32.totalorder %s3881_s30, 0 }
  0x8b   : > { %v2349_v25 = vpack.c.bf16 %v1204_v22, %v1203_v20  ;;  %v1221_v29 = vld [vmem:[#allocation5 + $0x1a0] sm:$0xff]  ;;  %v1222_v30 = vld [vmem:[#allocation5 + $0x1a8] sm:$0xff]  ;;  %v2321_v33 = vpack.c.bf16 %v1174_v28, %v1173_v27  ;;  %v1191_v35 = vld [vmem:[#allocation5 + $0xb0] sm:$0xff]  ;;  %p2655_p9 = scmp.ne.s32.totalorder %s3807_s12, %s2654_s27  ;;  %s2736_s22 = smov [#allocation8]  }
  0x8c   : > { %2348 = vmatprep.subr.bf16.mxu1 %v2347_v21  ;;  %v1205_v31 = vld [vmem:[#allocation5 + $0x120] sm:$0xff]  ;;  %v1206_v32 = vld [vmem:[#allocation5 + $0x128] sm:$0xff]  ;;  %2318 = vmatpush3.bf16.msra.mxu0 %v2317_v17  ;;  %v2351_v34 = vpack.c.bf16 %v1222_v30, %v1221_v29  ;;  %v1192_v36 = vld [vmem:[#allocation5 + $0xb8] sm:$0xff]  ;;  %s2658_s14 = sshll.u32 %s2736_s22, 4  ;;  %s2659_s14 = int_to_ptr.vmem [resolvable:$false] %s2658_s14 }
  0x8d   : > { %v1175_v37 = vld [vmem:[#allocation5 + $0x30] sm:$0xff]  ;;  %2320 = vmatprep.subr.bf16.mxu0 %v2319_v26  ;;  %v2353_v38 = vpack.c.bf16 %v1206_v32, %v1205_v31  ;;  %v2323_v39 = vpack.c.bf16 %v1192_v36, %v1191_v35  ;;  %v1176_v40 = vld [vmem:[#allocation5 + $0x38] sm:$0xff]  ;;  %v1193_v46 = vld [vmem:[#allocation5 + $0xc0] sm:$0xff]  ;;  %p2656_p1 = pnand %p2655_p9, %p3954_p10  ;;  %s2660_s15 = scalar_lea.vmem %s2659_s14, 256 }
  0x8e   : > { %2350 = vmatpush3.bf16.msra.mxu1 %v2349_v25  ;;  %v1223_v41 = vld [vmem:[#allocation5 + $0x1b0] sm:$0xff]  ;;  %v1224_v42 = vld [vmem:[#allocation5 + $0x1b8] sm:$0xff]  ;;  %v1194_v47 = vld [vmem:[#allocation5 + $0xc8] sm:$0xff]  ;;  %v2325_v50 = vpack.c.bf16 %v1176_v40, %v1175_v37  ;;  %p2661_p5 = scmp.lt.s32.totalorder %s3807_s12, %s2659_s14  ;;  %p2662_p6 = scmp.lt.s32.totalorder %s2660_s15, %s2654_s27 }
  0x8f   : > { %2352 = vmatprep.subr.bf16.mxu1 %v2351_v34  ;;  %v2355_v43 = vpack.c.bf16 %v1224_v42, %v1223_v41  ;;  %v1207_v44 = vld [vmem:[#allocation5 + $0x130] sm:$0xff]  ;;  %v1208_v45 = vld [vmem:[#allocation5 + $0x138] sm:$0xff]  ;;  %v1177_v48 = vld [vmem:[#allocation5 + $0x40] sm:$0xff]  ;;  %v2327_v55 = vpack.c.bf16 %v1194_v47, %v1193_v46  ;;  %p2657_p3 = pneg %p2656_p1 }
  0x90   : > { %v1178_v49 = vld [vmem:[#allocation5 + $0x48] sm:$0xff]  ;;  %2322 = vmatpush3.bf16.msra.mxu0 %v2321_v33  ;;  %v1225_v51 = vld [vmem:[#allocation5 + $0x1c0] sm:$0xff]  ;;  %v2357_v54 = vpack.c.bf16 %v1208_v45, %v1207_v44  ;;  %v1195_v57 = vld [vmem:[#allocation5 + $0xd0] sm:$0xff]  ;;  %p2663_p11 = por %p2662_p6, %p2661_p5 }
  0x91   : > { %v1226_v52 = vld [vmem:[#allocation5 + $0x1c8] sm:$0xff]  ;;  %v1209_v53 = vld [vmem:[#allocation5 + $0x140] sm:$0xff]  ;;  %2324 = vmatprep.subr.bf16.mxu0 %v2323_v39  ;;  %v1196_v58 = vld [vmem:[#allocation5 + $0xd8] sm:$0xff]  ;;  %v2329_v2 = vpack.c.bf16 %v1178_v49, %v1177_v48 }
  0x92   : > { %2354 = vmatpush3.bf16.msra.mxu1 %v2353_v38  ;;  %v1210_v56 = vld [vmem:[#allocation5 + $0x148] sm:$0xff]  ;;  %v2359_v59 = vpack.c.bf16 %v1226_v52, %v1225_v51  ;;  %v1179_v60 = vld [vmem:[#allocation5 + $0x50] sm:$0xff]  ;;  %v1180_v61 = vld [vmem:[#allocation5 + $0x58] sm:$0xff]  ;;  %v2331_v7 = vpack.c.bf16 %v1196_v58, %v1195_v57  ;;  %p2664_p13 = pnand %p2663_p11, %p2657_p3 }
  0x93   : > { %2356 = vmatprep.subr.bf16.mxu1 %v2355_v43  ;;  %v1227_v62 = vld [vmem:[#allocation5 + $0x1d0] sm:$0xff]  ;;  %v1228_v63 = vld [vmem:[#allocation5 + $0x1d8] sm:$0xff]  ;;  %v1197_v3 = vld [vmem:[#allocation5 + $0xe0] sm:$0xff]  ;;  %v2361_v6 = vpack.c.bf16 %v1210_v56, %v1209_v53  ;;  %v2333_v15 = vpack.c.bf16 %v1180_v61, %v1179_v60 }
  0x94   : > { %v2952_v0 = vld [vmem:[#allocation5 + $0x150] sm:$0xff]  ;;  %v2954_v1 = vld [vmem:[#allocation5 + $0x158] sm:$0xff]  ;;  %2326 = vmatpush3.bf16.msra.mxu0 %v2325_v50  ;;  %v1198_v4 = vld [vmem:[#allocation5 + $0xe8] sm:$0xff]  ;;  %v2363_v11 = vpack.c.bf16 %v1228_v63, %v1227_v62 }
  0x95   : > { %v2956_v5 = vld [vmem:[#allocation5 + $0x60] sm:$0xff]  ;;  %2328 = vmatprep.subr.bf16.mxu0 %v2327_v55  ;;  %v2958_v8 = vld [vmem:[#allocation5 + $0x68] sm:$0xff]  ;;  %v2964_v14 = vld [vmem:[#allocation5 + $0xf0] sm:$0xff]  ;;  %v2365_v16 = vpack.c.bf16 %v2954_v1, %v2952_v0  ;;  %v2335_v17 = vpack.c.bf16 %v1198_v4, %v1197_v3 }
  0x96   : > { %2358 = vmatpush3.bf16.msra.mxu1 %v2357_v54  ;;  %v1229_v9 = vld [vmem:[#allocation5 + $0x1e0] sm:$0xff]  ;;  %v1230_v10 = vld [vmem:[#allocation5 + $0x1e8] sm:$0xff]  ;;  %v2968_v18 = vld [vmem:[#allocation5 + $0xf8] sm:$0xff]  ;;  %v2337_v21 = vpack.c.bf16 %v2958_v8, %v2956_v5 }
  0x97   : > { %2360 = vmatprep.subr.bf16.mxu1 %v2359_v59  ;;  %v2960_v12 = vld [vmem:[#allocation5 + $0x160] sm:$0xff]  ;;  %v2962_v13 = vld [vmem:[#allocation5 + $0x168] sm:$0xff]  ;;  %v2970_v19 = vld [vmem:[#allocation5 + $0x70] sm:$0xff]  ;;  %v2367_v22 = vpack.c.bf16 %v1230_v10, %v1229_v9  ;;  %v2339_v24 = vpack.c.bf16 %v2968_v18, %v2964_v14 }
  0x98   : > { %v2972_v20 = vld [vmem:[#allocation5 + $0x78] sm:$0xff]  ;;  %2330 = vmatpush3.bf16.msra.mxu0 %v2329_v2  ;;  %v2369_v23 = vpack.c.bf16 %v2962_v13, %v2960_v12  ;;  %v2980_v25 = vld [vmem:[#allocation5 + $0x1f0] sm:$0xff]  ;;  %v2985_v27 = vld [vmem:[%s2942_s16] sm:$0xff] }
  0x99   : > { %v2982_v26 = vld [vmem:[#allocation5 + $0x1f8] sm:$0xff]  ;;  %2332 = vmatprep.subr.bf16.mxu0 %v2331_v7  ;;  %v2341_v28 = vpack.c.bf16 %v2972_v20, %v2970_v19  ;;  %v2992_v30 = vld [vmem:[%s2942_s16 + $0x28] sm:$0xff]  ;;  %v2995_v31 = vld [vmem:[%s2942_s16 + $0x50] sm:$0xff]  ;;  %v370_v33 = vunpack.c.h.bf16 %v2985_v27  ;;  %v369_v34 = vunpack.c.l.bf16 %v2985_v27 }
  0x9a   : > { %2362 = vmatpush3.bf16.msra.mxu1 %v2361_v6  ;;  %v2371_v29 = vpack.c.bf16 %v2982_v26, %v2980_v25  ;;  %v2998_v32 = vld [vmem:[%s2942_s16 + $0x78] sm:$0xff]  ;;  %v3003_v35 = vld [vmem:[%s2942_s16 + $0xa0] sm:$0xff]  ;;  %v3006_v36 = vld [vmem:[%s2942_s16 + $0xc8] sm:$0xff]  ;;  %v380_v38 = vunpack.c.h.bf16 %v2992_v30  ;;  %v390_v39 = vunpack.c.h.bf16 %v2995_v31  ;;  %v379_v41 = vunpack.c.l.bf16 %v2992_v30 }
  0x9b   : > { %2364 = vmatprep.subr.bf16.mxu1 %v2363_v11  ;;  %v3009_v37 = vld [vmem:[%s2942_s16 + $0xf0] sm:$0xff]  ;;  %v400_v40 = vunpack.c.h.bf16 %v2998_v32  ;;  %v3016_v42 = vld [vmem:[%s2942_s16 + $0x118] sm:$0xff]  ;;  %v3019_v43 = vld [vmem:[%s2942_s16 + $0x140] sm:$0xff]  ;;  %v410_v45 = vunpack.c.h.bf16 %v3003_v35  ;;  %v420_v46 = vunpack.c.h.bf16 %v3006_v36  ;;  %v389_v48 = vunpack.c.l.bf16 %v2995_v31 }
  0x9c   : > { %v3022_v44 = vld [vmem:[%s2942_s16 + $0x168] sm:$0xff]  ;;  %v430_v47 = vunpack.c.h.bf16 %v3009_v37  ;;  %2334 = vmatpush3.bf16.msra.mxu0 %v2333_v15  ;;  %v3029_v49 = vld [vmem:[%s2942_s16 + $0x190] sm:$0xff]  ;;  %v3032_v50 = vld [vmem:[%s2942_s16 + $0x1b8] sm:$0xff]  ;;  %v440_v52 = vunpack.c.h.bf16 %v3016_v42  ;;  %v450_v53 = vunpack.c.h.bf16 %v3019_v43  ;;  %v536_v55 = vadd.f32 %v380_v38, %v370_v33 }
  0x9d   : > { %v3035_v51 = vld [vmem:[%s2942_s16 + $0x1e0] sm:$0xff]  ;;  %v460_v54 = vunpack.c.h.bf16 %v3022_v44  ;;  %2336 = vmatprep.subr.bf16.mxu0 %v2335_v17  ;;  %v3041_v56 = vld [vmem:[%s2942_s16 + $0x208] sm:$0xff]  ;;  %v3044_v57 = vld [vmem:[%s2942_s16 + $0x230] sm:$0xff]  ;;  %v470_v59 = vunpack.c.h.bf16 %v3029_v49  ;;  %v480_v60 = vunpack.c.h.bf16 %v3032_v50  ;;  %v606_v62 = vadd.f32 %v400_v40, %v390_v39 }
  0x9e   : > { %2366 = vmatpush3.bf16.msra.mxu1 %v2365_v16  ;;  %v3047_v58 = vld [vmem:[%s2942_s16 + $0x258] sm:$0xff]  ;;  %v490_v61 = vunpack.c.h.bf16 %v3035_v51  ;;  %v500_v63 = vunpack.c.h.bf16 %v3041_v56  ;;  %v510_v0 = vunpack.c.h.bf16 %v3044_v57  ;;  %v537_v2 = vrot.slane %v536_v55, 4  ;;  %v1215_v20 = vld [vmem:[#allocation5 + $0x170] sm:$0xff] }
  0x9f   : > { %2368 = vmatprep.subr.bf16.mxu1 %v2367_v22  ;;  %v520_v1 = vunpack.c.h.bf16 %v3047_v58  ;;  %v607_v3 = vrot.slane %v606_v62, 4  ;;  %v676_v4 = vadd.f32 %v420_v46, %v410_v45  ;;  %v746_v5 = vadd.f32 %v440_v52, %v430_v47 }
  0xa0   : > { %v816_v6 = vadd.f32 %v460_v54, %v450_v53  ;;  %2338 = vmatpush3.bf16.msra.mxu0 %v2337_v21  ;;  %v538_v7 = vadd.f32 %v537_v2, %v536_v55  ;;  %v886_v8 = vadd.f32 %v480_v60, %v470_v59  ;;  %v956_v9 = vadd.f32 %v500_v63, %v490_v61 }
  0xa1   : > { %v1026_v10 = vadd.f32 %v520_v1, %v510_v0  ;;  %2340 = vmatprep.subr.bf16.mxu0 %v2339_v24  ;;  %v608_v11 = vadd.f32 %v607_v3, %v606_v62  ;;  %v677_v12 = vrot.slane %v676_v4, 4  ;;  %v747_v13 = vrot.slane %v746_v5, 4 }
  0xa2   : > { %2370 = vmatpush3.bf16.msra.mxu1 %v2369_v23  ;;  %v817_v14 = vrot.slane %v816_v6, 4  ;;  %v539_v15 = vrot.slane %v538_v7, 2  ;;  %v887_v16 = vrot.slane %v886_v8, 4  ;;  %v957_v17 = vrot.slane %v956_v9, 4 }
  0xa3   : > { %2372 = vmatprep.subr.bf16.mxu1 %v2371_v29  ;;  %v1027_v18 = vrot.slane %v1026_v10, 4  ;;  %v609_v22 = vrot.slane %v608_v11, 2  ;;  %v678_v25 = vadd.f32 %v677_v12, %v676_v4  ;;  %v748_v21 = vadd.f32 %v747_v13, %v746_v5 }
  0xa4   : > { %v818_v26 = vadd.f32 %v817_v14, %v816_v6  ;;  %2342 = vmatpush3.bf16.msra.mxu0 %v2341_v28  ;;  %v540_v23 = vadd.f32 %v539_v15, %v538_v7  ;;  %v888_v24 = vadd.f32 %v887_v16, %v886_v8  ;;  %v958_v33 = vadd.f32 %v957_v17, %v956_v9  ;;  %v1216_v28 = vld [vmem:[#allocation5 + $0x178] sm:$0xff] }
  0xa5   : > { %v1028_v38 = vadd.f32 %v1027_v18, %v1026_v10  ;;  %v610_v29 = vadd.f32 %v609_v22, %v608_v11  ;;  %v679_v39 = vrot.slane %v678_v25, 2  ;;  %v749_v40 = vrot.slane %v748_v21, 2 }
  0xa6   : > { %v819_v45 = vrot.slane %v818_v26, 2  ;;  %v541_v46 = vrot.slane %v540_v23, 1  ;;  %v889_v47 = vrot.slane %v888_v24, 2  ;;  %v959_v52 = vrot.slane %v958_v33, 2 }
  0xa7   : > { %v1029_v53 = vrot.slane %v1028_v38, 2  ;;  %v611_v54 = vrot.slane %v610_v29, 1  ;;  %v680_v55 = vadd.f32 %v679_v39, %v678_v25  ;;  %v750_v59 = vadd.f32 %v749_v40, %v748_v21 }
  0xa8   : > { %v820_v19 = vadd.f32 %v819_v45, %v818_v26  ;;  %v542_v60 = vadd.f32 %v541_v46, %v540_v23  ;;  %v890_v61 = vadd.f32 %v889_v47, %v888_v24  ;;  %v960_v62 = vadd.f32 %v959_v52, %v958_v33 }
  0xa9   : > { %v1030_v63 = vadd.f32 %v1029_v53, %v1028_v38  ;;  %v612_v0 = vadd.f32 %v611_v54, %v610_v29  ;;  %v681_v1 = vrot.slane %v680_v55, 1  ;;  %v751_v2 = vrot.slane %v750_v59, 1 }
  0xaa   : > { %v821_v3 = vrot.slane %v820_v19, 1  ;;  %v891_v4 = vrot.slane %v890_v61, 1  ;;  %v961_v5 = vrot.slane %v960_v62, 1  ;;  %v2373_v7 = vpack.c.bf16 %v1216_v28, %v1215_v20 }
  0xab   : > { %v1031_v6 = vrot.slane %v1030_v63, 1  ;;  %v682_v8 = vadd.f32 %v681_v1, %v680_v55  ;;  %v752_v9 = vadd.f32 %v751_v2, %v750_v59  ;;  %v1430_v11 = vsel %vm1416_vm0, %v612_v0, %v542_v60 }
  0xac   : > { %v822_v10 = vadd.f32 %v821_v3, %v820_v19  ;;  %v892_v12 = vadd.f32 %v891_v4, %v890_v61  ;;  %v962_v13 = vadd.f32 %v961_v5, %v960_v62  ;;  %2374 = vmatpush3.bf16.msra.mxu1 %v2373_v7  ;;  %v399_v15 = vunpack.c.l.bf16 %v2998_v32 }
  0xad   : > { %v1032_v14 = vadd.f32 %v1031_v6, %v1030_v63  ;;  %v1431_v16 = vsel %vm1418_vm1, %v682_v8, %v1430_v11  ;;  %v409_v17 = vunpack.c.l.bf16 %v3003_v35  ;;  %v419_v18 = vunpack.c.l.bf16 %v3006_v36 }
  0xae   : > { %v429_v22 = vunpack.c.l.bf16 %v3009_v37  ;;  %v1432_v25 = vsel %vm1420_vm2, %v752_v9, %v1431_v16  ;;  %v439_v21 = vunpack.c.l.bf16 %v3016_v42  ;;  %v449_v26 = vunpack.c.l.bf16 %v3019_v43  ;;  %v1249_v16 = vld [vmem:[#allocation5 + $0x280] sm:$0xff] }
  0xaf   : > { %v459_v23 = vunpack.c.l.bf16 %v3022_v44  ;;  %v1433_v24 = vsel %vm1422_vm3, %v822_v10, %v1432_v25  ;;  %v469_v32 = vunpack.c.l.bf16 %v3029_v49  ;;  %v479_v33 = vunpack.c.l.bf16 %v3032_v50 }
  0xb0   : > { %v489_v35 = vunpack.c.l.bf16 %v3035_v51  ;;  %v1434_v36 = vsel %vm1424_vm4, %v892_v12, %v1433_v24  ;;  %v499_v37 = vunpack.c.l.bf16 %v3041_v56  ;;  %v509_v38 = vunpack.c.l.bf16 %v3044_v57  ;;  %v3091_v24 = vld [vmem:[%s2942_s16 + $0x58] sm:$0xff] }
  0xb1   : > { %v519_v42 = vunpack.c.l.bf16 %v3047_v58  ;;  %v1435_v43 = vsel %vm1426_vm5, %v962_v13, %v1434_v36  ;;  %v529_v44 = vadd.f32 %v379_v41, %v369_v34  ;;  %v599_v49 = vadd.f32 %v399_v15, %v389_v48 }
  0xb2   : > { %v669_v50 = vadd.f32 %v419_v18, %v409_v17  ;;  %v1436_v51 = vsel %vm1428_vm6, %v1032_v14, %v1435_v43  ;;  %v739_v29 = vadd.f32 %v439_v21, %v429_v22  ;;  %v809_v39 = vadd.f32 %v459_v23, %v449_v26  ;;  %v1250_v17 = vld [vmem:[#allocation5 + $0x288] sm:$0xff]  ;;  %v3088_v23 = vld [vmem:[%s2942_s16 + $0x30] sm:$0xff] }
  0xb3   : > { %v879_v56 = vadd.f32 %v479_v33, %v469_v32  ;;  %1567 = vmatprep.mubr.f32.mxu0 %v1436_v51  ;;  %v530_v57 = vrot.slane %v529_v44, 4  ;;  %v600_v40 = vrot.slane %v599_v49, 4  ;;  %v949_v45 = vadd.f32 %v499_v37, %v489_v35  ;;  %v3085_v18 = vld [vmem:[%s2942_s16 + $0x8] sm:$0xff]  ;;  %v3094_v37 = vld [vmem:[%s2942_s16 + $0x80] sm:$0xff] }
  0xb4   : > { %v670_v58 = vrot.slane %v669_v50, 4  ;;  %v740_v46 = vrot.slane %v739_v29, 4  ;;  %v810_v47 = vrot.slane %v809_v39, 4  ;;  %v1019_v52 = vadd.f32 %v519_v42, %v509_v38  ;;  %v3097_v38 = vld [vmem:[%s2942_s16 + $0xa8] sm:$0xff]  ;;  %v3100_v42 = vld [vmem:[%s2942_s16 + $0xd0] sm:$0xff]  ;;  %v3107_v51 = vld [vmem:[%s2942_s16 + $0x120] sm:$0xff] }
  0xb5   : > { %v880_v27 = vrot.slane %v879_v56, 4  ;;  %v531_v30 = vadd.f32 %v530_v57, %v529_v44  ;;  %v601_v34 = vadd.f32 %v600_v40, %v599_v49  ;;  %v950_v31 = vrot.slane %v949_v45, 4  ;;  %v3115_v40 = vld [vmem:[%s2942_s16 + $0x170] sm:$0xff] }
  0xb6   : > { %v671_v41 = vadd.f32 %v670_v58, %v669_v50  ;;  %v741_v48 = vadd.f32 %v740_v46, %v739_v29  ;;  %v811_v53 = vadd.f32 %v810_v47, %v809_v39  ;;  %v1020_v55 = vrot.slane %v1019_v52, 4  ;;  %v3104_v50 = vld [vmem:[%s2942_s16 + $0xf8] sm:$0xff]  ;;  %v3110_v29 = vld [vmem:[%s2942_s16 + $0x148] sm:$0xff] }
  0xb7   : > { %v881_v54 = vadd.f32 %v880_v27, %v879_v56  ;;  %v532_v59 = vrot.slane %v531_v30, 2  ;;  %v602_v19 = vrot.slane %v601_v34, 2  ;;  %v951_v28 = vadd.f32 %v950_v31, %v949_v45  ;;  %v3118_v58 = vld [vmem:[%s2942_s16 + $0x198] sm:$0xff]  ;;  %v3121_v45 = vld [vmem:[%s2942_s16 + $0x1c0] sm:$0xff] }
  0xb8   : > { %v672_v20 = vrot.slane %v671_v41, 2  ;;  %v742_v60 = vrot.slane %v741_v48, 2  ;;  %v812_v61 = vrot.slane %v811_v53, 2  ;;  %v1021_v63 = vadd.f32 %v1020_v55, %v1019_v52  ;;  %v3127_v52 = vld [vmem:[%s2942_s16 + $0x1e8] sm:$0xff] }
  0xb9   : > { %v882_v62 = vrot.slane %v881_v54, 2  ;;  %v533_v0 = vadd.f32 %v532_v59, %v531_v30  ;;  %v603_v1 = vadd.f32 %v602_v19, %v601_v34  ;;  %v952_v3 = vrot.slane %v951_v28, 2  ;;  %v3130_v30 = vld [vmem:[%s2942_s16 + $0x210] sm:$0xff]  ;;  %v3133_v34 = vld [vmem:[%s2942_s16 + $0x238] sm:$0xff] }
  0xba   : > { %v673_v2 = vadd.f32 %v672_v20, %v671_v41  ;;  %v743_v4 = vadd.f32 %v742_v60, %v741_v48  ;;  %v813_v5 = vadd.f32 %v812_v61, %v811_v53  ;;  %v1022_v7 = vrot.slane %v1021_v63, 2 }
  0xbb   : > { %v883_v6 = vadd.f32 %v882_v62, %v881_v54  ;;  %v534_v8 = vrot.slane %v533_v0, 1  ;;  %v604_v9 = vrot.slane %v603_v1, 1  ;;  %v953_v11 = vadd.f32 %v952_v3, %v951_v28  ;;  %v3140_v54 = vld [vmem:[%s2942_s16 + $0x260] sm:$0xff] }
  0xbc   : > { %v674_v10 = vrot.slane %v673_v2, 1  ;;  %v744_v12 = vrot.slane %v743_v4, 1  ;;  %v814_v13 = vrot.slane %v813_v5, 1  ;;  %v1023_v15 = vadd.f32 %v1022_v7, %v1021_v63 }
  0xbd   : > { %v884_v14 = vrot.slane %v883_v6, 1  ;;  %v535_v22 = vadd.f32 %v534_v8, %v533_v0  ;;  %v605_v25 = vadd.f32 %v604_v9, %v603_v1  ;;  %v954_v26 = vrot.slane %v953_v11, 1 }
  0xbe   : > { %v675_v21 = vadd.f32 %v674_v10, %v673_v2  ;;  %v745_v32 = vadd.f32 %v744_v12, %v743_v4  ;;  %v815_v33 = vadd.f32 %v814_v13, %v813_v5  ;;  %v1024_v36 = vrot.slane %v1023_v15, 1 }
  0xbf   : > { %v885_v35 = vadd.f32 %v884_v14, %v883_v6  ;;  %v955_v43 = vadd.f32 %v954_v26, %v953_v11  ;;  %v1417_v44 = vsel %vm1416_vm0, %v605_v25, %v535_v22  ;;  %v2375_v49 = vpack.c.bf16 %v1250_v17, %v1249_v16 }
  0xc0   : > { %v372_v39 = vunpack.c.h.bf16 %v3085_v18  ;;  %v1025_v56 = vadd.f32 %v1024_v36, %v1023_v15  ;;  %v1419_v57 = vsel %vm1418_vm1, %v675_v21, %v1417_v44  ;;  %v382_v46 = vunpack.c.h.bf16 %v3088_v23 }
  0xc1   : > { %v392_v47 = vunpack.c.h.bf16 %v3091_v24  ;;  %v1421_v27 = vsel %vm1420_vm2, %v745_v32, %v1419_v57  ;;  %2376 = vmatprep.subr.bf16.mxu0 %v2375_v49  ;;  %v402_v41 = vunpack.c.h.bf16 %v3094_v37  ;;  %v412_v31 = vunpack.c.h.bf16 %v3097_v38 }
  0xc2   : > { %v422_v48 = vunpack.c.h.bf16 %v3100_v42  ;;  %v1423_v53 = vsel %vm1422_vm3, %v815_v33, %v1421_v27  ;;  %v432_v55 = vunpack.c.h.bf16 %v3104_v50  ;;  %v442_v59 = vunpack.c.h.bf16 %v3107_v51 }
  0xc3   : > { %v452_v19 = vunpack.c.h.bf16 %v3110_v29  ;;  %v1425_v20 = vsel %vm1424_vm4, %v885_v35, %v1423_v53  ;;  %v462_v28 = vunpack.c.h.bf16 %v3115_v40  ;;  %v472_v60 = vunpack.c.h.bf16 %v3118_v58 }
  0xc4   : > { %v482_v61 = vunpack.c.h.bf16 %v3121_v45  ;;  %v1427_v62 = vsel %vm1426_vm5, %v955_v43, %v1425_v20  ;;  %v492_v63 = vunpack.c.h.bf16 %v3127_v52  ;;  %v502_v0 = vunpack.c.h.bf16 %v3130_v30 }
  0xc5   : > { %v512_v1 = vunpack.c.h.bf16 %v3133_v34  ;;  %v1429_v2 = vsel %vm1428_vm6, %v1025_v56, %v1427_v62  ;;  %v522_v3 = vunpack.c.h.bf16 %v3140_v54  ;;  %v550_v4 = vadd.f32 %v382_v46, %v372_v39 }
  0xc6   : > { %v620_v5 = vadd.f32 %v402_v41, %v392_v47  ;;  %1568 = vmatmul.mubr.f32.vlgmr.msra.gmra.mrb[0].mxu0 %v1429_v2  ;;  %v690_v6 = vadd.f32 %v422_v48, %v412_v31  ;;  %v760_v7 = vadd.f32 %v442_v59, %v432_v55  ;;  %v830_v8 = vadd.f32 %v462_v28, %v452_v19  ;;  %v1233_v2 = vld [vmem:[#allocation5 + $0x200] sm:$0xff] }
  0xc7   : > { %v900_v9 = vadd.f32 %v482_v61, %v472_v60  ;;  %v551_v10 = vrot.slane %v550_v4, 4  ;;  %v970_v12 = vadd.f32 %v502_v0, %v492_v63  ;;  %v1040_v13 = vadd.f32 %v522_v3, %v512_v1  ;;  %v1234_v3 = vld [vmem:[#allocation5 + $0x208] sm:$0xff] }
  0xc8   : > { %v621_v11 = vrot.slane %v620_v5, 4  ;;  %v691_v14 = vrot.slane %v690_v6, 4  ;;  %v761_v15 = vrot.slane %v760_v7, 4  ;;  %v831_v16 = vrot.slane %v830_v8, 4 }
  0xc9   : > { %v901_v17 = vrot.slane %v900_v9, 4  ;;  %v552_v22 = vadd.f32 %v551_v10, %v550_v4  ;;  %v971_v21 = vrot.slane %v970_v12, 4  ;;  %v1041_v26 = vrot.slane %v1040_v13, 4 }
  0xca   : > { %v622_v25 = vadd.f32 %v621_v11, %v620_v5  ;;  %v692_v32 = vadd.f32 %v691_v14, %v690_v6  ;;  %v762_v33 = vadd.f32 %v761_v15, %v760_v7  ;;  %v832_v35 = vadd.f32 %v831_v16, %v830_v8 }
  0xcb   : > { %v902_v36 = vadd.f32 %v901_v17, %v900_v9  ;;  %v553_v43 = vrot.slane %v552_v22, 2  ;;  %v972_v49 = vadd.f32 %v971_v21, %v970_v12  ;;  %v1042_v39 = vadd.f32 %v1041_v26, %v1040_v13 }
  0xcc   : > { %v623_v44 = vrot.slane %v622_v25, 2  ;;  %v693_v56 = vrot.slane %v692_v32, 2  ;;  %v763_v57 = vrot.slane %v762_v33, 2  ;;  %v833_v46 = vrot.slane %v832_v35, 2 }
  0xcd   : > { %v903_v47 = vrot.slane %v902_v36, 2  ;;  %v554_v27 = vadd.f32 %v553_v43, %v552_v22  ;;  %v973_v31 = vrot.slane %v972_v49, 2  ;;  %v1043_v48 = vrot.slane %v1042_v39, 2 }
  0xce   : > { %v624_v41 = vadd.f32 %v623_v44, %v622_v25  ;;  %v694_v53 = vadd.f32 %v693_v56, %v692_v32  ;;  %v764_v55 = vadd.f32 %v763_v57, %v762_v33  ;;  %v834_v59 = vadd.f32 %v833_v46, %v832_v35 }
  0xcf   : > { %v904_v19 = vadd.f32 %v903_v47, %v902_v36  ;;  %v555_v20 = vrot.slane %v554_v27, 1  ;;  %v974_v60 = vadd.f32 %v973_v31, %v972_v49  ;;  %v1044_v61 = vadd.f32 %v1043_v48, %v1042_v39 }
  0xd0   : > { %v625_v28 = vrot.slane %v624_v41, 1  ;;  %v695_v62 = vrot.slane %v694_v53, 1  ;;  %v765_v63 = vrot.slane %v764_v55, 1  ;;  %v835_v0 = vrot.slane %v834_v59, 1 }
  0xd1   : > { %v905_v1 = vrot.slane %v904_v19, 1  ;;  %v556_v4 = vadd.f32 %v555_v20, %v554_v27  ;;  %v975_v6 = vrot.slane %v974_v60, 1  ;;  %v1045_v7 = vrot.slane %v1044_v61, 1 }
  0xd2   : > { %v626_v5 = vadd.f32 %v625_v28, %v624_v41  ;;  %v696_v8 = vadd.f32 %v695_v62, %v694_v53  ;;  %v766_v9 = vadd.f32 %v765_v63, %v764_v55  ;;  %v836_v10 = vadd.f32 %v835_v0, %v834_v59 }
  0xd3   : > { %v906_v11 = vadd.f32 %v905_v1, %v904_v19  ;;  %v976_v12 = vadd.f32 %v975_v6, %v974_v60  ;;  %v1046_v13 = vadd.f32 %v1045_v7, %v1044_v61  ;;  %v2377_v15 = vpack.c.bf16 %v1234_v3, %v1233_v2 }
  0xd4   : > { %v1444_v14 = vsel %vm1416_vm0, %v626_v5, %v556_v4  ;;  %v371_v17 = vunpack.c.l.bf16 %v3085_v18  ;;  %v381_v22 = vunpack.c.l.bf16 %v3088_v23  ;;  %v391_v25 = vunpack.c.l.bf16 %v3091_v24 }
  0xd5   : > { %v1445_v16 = vsel %vm1418_vm1, %v696_v8, %v1444_v14  ;;  %2378 = vmatpush3.bf16.msra.mxu0 %v2377_v15  ;;  %v401_v26 = vunpack.c.l.bf16 %v3094_v37  ;;  %v411_v32 = vunpack.c.l.bf16 %v3097_v38  ;;  %v421_v33 = vunpack.c.l.bf16 %v3100_v42 }
  0xd6   : > { %v1446_v21 = vsel %vm1420_vm2, %v766_v9, %v1445_v16  ;;  %v431_v36 = vunpack.c.l.bf16 %v3104_v50  ;;  %v441_v43 = vunpack.c.l.bf16 %v3107_v51  ;;  %v451_v18 = vunpack.c.l.bf16 %v3110_v29 }
  0xd7   : > { %v1447_v35 = vsel %vm1422_vm3, %v836_v10, %v1446_v21  ;;  %v461_v24 = vunpack.c.l.bf16 %v3115_v40  ;;  %v471_v44 = vunpack.c.l.bf16 %v3118_v58  ;;  %v481_v37 = vunpack.c.l.bf16 %v3121_v45  ;;  %v3186_v21 = vld [vmem:[#allocation5 + $0x290] sm:$0xff] }
  0xd8   : > { %v1448_v23 = vsel %vm1424_vm4, %v906_v11, %v1447_v35  ;;  %v491_v42 = vunpack.c.l.bf16 %v3127_v52  ;;  %v501_v49 = vunpack.c.l.bf16 %v3130_v30  ;;  %v511_v50 = vunpack.c.l.bf16 %v3133_v34 }
  0xd9   : > { %v1449_v38 = vsel %vm1426_vm5, %v976_v12, %v1448_v23  ;;  %v521_v29 = vunpack.c.l.bf16 %v3140_v54  ;;  %v543_v39 = vadd.f32 %v381_v22, %v371_v17  ;;  %v613_v56 = vadd.f32 %v401_v26, %v391_v25  ;;  %v3178_v12 = vld [vmem:[#allocation5 + $0x380] sm:$0xff]  ;;  %v3184_v25 = vld [vmem:[#allocation5 + $0x308] sm:$0xff]  ;;  %v3188_v26 = vld [vmem:[#allocation5 + $0x298] sm:$0xff] }
  0xda   : > { %v1450_v51 = vsel %vm1428_vm6, %v1046_v13, %v1449_v38  ;;  %v683_v40 = vadd.f32 %v421_v33, %v411_v32  ;;  %v753_v57 = vadd.f32 %v441_v43, %v431_v36  ;;  %v823_v58 = vadd.f32 %v461_v24, %v451_v18  ;;  %v3180_v13 = vld [vmem:[#allocation5 + $0x388] sm:$0xff]  ;;  %v3182_v22 = vld [vmem:[#allocation5 + $0x300] sm:$0xff]  ;;  %v3190_v32 = vld [vmem:[#allocation5 + $0x210] sm:$0xff] }
  0xdb   : > { %1637 = vmatprep.mubr.f32.mxu1 %v1450_v51  ;;  %v893_v46 = vadd.f32 %v481_v37, %v471_v44  ;;  %v544_v45 = vrot.slane %v543_v39, 4  ;;  %v614_v47 = vrot.slane %v613_v56, 4  ;;  %v963_v27 = vadd.f32 %v501_v49, %v491_v42  ;;  %v3192_v33 = vld [vmem:[#allocation5 + $0x218] sm:$0xff]  ;;  %v3194_v23 = vld [vmem:[#allocation5 + $0x390] sm:$0xff]  ;;  %v3202_v38 = vld [vmem:[#allocation5 + $0x2a0] sm:$0xff] }
  0xdc   : > { %v1033_v41 = vadd.f32 %v521_v29, %v511_v50  ;;  %v684_v52 = vrot.slane %v683_v40, 4  ;;  %v754_v31 = vrot.slane %v753_v57, 4  ;;  %v824_v30 = vrot.slane %v823_v58, 4  ;;  %v3196_v24 = vld [vmem:[#allocation5 + $0x398] sm:$0xff]  ;;  %v3198_v44 = vld [vmem:[#allocation5 + $0x310] sm:$0xff]  ;;  %v3204_v42 = vld [vmem:[#allocation5 + $0x2a8] sm:$0xff] }
  0xdd   : > { %v894_v48 = vrot.slane %v893_v46, 4  ;;  %v545_v34 = vadd.f32 %v544_v45, %v543_v39  ;;  %v615_v53 = vadd.f32 %v614_v47, %v613_v56  ;;  %v964_v55 = vrot.slane %v963_v27, 4  ;;  %v3200_v37 = vld [vmem:[#allocation5 + $0x318] sm:$0xff]  ;;  %v3206_v39 = vld [vmem:[#allocation5 + $0x220] sm:$0xff]  ;;  %v3208_v56 = vld [vmem:[#allocation5 + $0x228] sm:$0xff] }
  0xde   : > { %v1034_v59 = vrot.slane %v1033_v41, 4  ;;  %v685_v54 = vadd.f32 %v684_v52, %v683_v40  ;;  %v755_v19 = vadd.f32 %v754_v31, %v753_v57  ;;  %v825_v20 = vadd.f32 %v824_v30, %v823_v58  ;;  %v3210_v40 = vld [vmem:[#allocation5 + $0x3a0] sm:$0xff]  ;;  %v3212_v57 = vld [vmem:[#allocation5 + $0x3a8] sm:$0xff]  ;;  %v3218_v52 = vld [vmem:[#allocation5 + $0x2b0] sm:$0xff] }
  0xdf   : > { %v895_v28 = vadd.f32 %v894_v48, %v893_v46  ;;  %v546_v60 = vrot.slane %v545_v34, 2  ;;  %v616_v61 = vrot.slane %v615_v53, 2  ;;  %v965_v62 = vadd.f32 %v964_v55, %v963_v27  ;;  %v3214_v58 = vld [vmem:[#allocation5 + $0x320] sm:$0xff]  ;;  %v3216_v46 = vld [vmem:[#allocation5 + $0x328] sm:$0xff]  ;;  %v3220_v31 = vld [vmem:[#allocation5 + $0x2b8] sm:$0xff] }
  0xe0   : > { %v1035_v63 = vadd.f32 %v1034_v59, %v1033_v41  ;;  %v686_v0 = vrot.slane %v685_v54, 2  ;;  %v756_v1 = vrot.slane %v755_v19, 2  ;;  %v826_v2 = vrot.slane %v825_v20, 2  ;;  %v3222_v30 = vld [vmem:[#allocation5 + $0x230] sm:$0xff]  ;;  %v3224_v48 = vld [vmem:[#allocation5 + $0x238] sm:$0xff] }
  0xe1   : > { %v896_v3 = vrot.slane %v895_v28, 2  ;;  %v547_v4 = vadd.f32 %v546_v60, %v545_v34  ;;  %v617_v5 = vadd.f32 %v616_v61, %v615_v53  ;;  %v966_v6 = vrot.slane %v965_v62, 2  ;;  %v3226_v34 = vld [vmem:[#allocation5 + $0x3b0] sm:$0xff]  ;;  %v3228_v53 = vld [vmem:[#allocation5 + $0x3b8] sm:$0xff]  ;;  %v3237_v60 = vld [vmem:[#allocation5 + $0x2c0] sm:$0xff] }
  0xe2   : > { %v1036_v7 = vrot.slane %v1035_v63, 2  ;;  %v687_v8 = vadd.f32 %v686_v0, %v685_v54  ;;  %v757_v9 = vadd.f32 %v756_v1, %v755_v19  ;;  %v827_v10 = vadd.f32 %v826_v2, %v825_v20  ;;  %v3233_v20 = vld [vmem:[#allocation5 + $0x330] sm:$0xff]  ;;  %v3239_v61 = vld [vmem:[#allocation5 + $0x2c8] sm:$0xff] }
  0xe3   : > { %v897_v11 = vadd.f32 %v896_v3, %v895_v28  ;;  %v548_v14 = vrot.slane %v547_v4, 1  ;;  %v618_v15 = vrot.slane %v617_v5, 1  ;;  %v967_v16 = vadd.f32 %v966_v6, %v965_v62  ;;  %v3235_v28 = vld [vmem:[#allocation5 + $0x338] sm:$0xff]  ;;  %v3241_v62 = vld [vmem:[#allocation5 + $0x240] sm:$0xff] }
  0xe4   : > { %v1037_v17 = vadd.f32 %v1036_v7, %v1035_v63  ;;  %v688_v35 = vrot.slane %v687_v8, 1  ;;  %v758_v36 = vrot.slane %v757_v9, 1  ;;  %v828_v43 = vrot.slane %v827_v10, 1  ;;  %v3243_v63 = vld [vmem:[#allocation5 + $0x248] sm:$0xff]  ;;  %v3256_v6 = vld [vmem:[#allocation5 + $0x340] sm:$0xff] }
  0xe5   : > { %v898_v18 = vrot.slane %v897_v11, 1  ;;  %v549_v49 = vadd.f32 %v548_v14, %v547_v4  ;;  %v619_v50 = vadd.f32 %v618_v15, %v617_v5  ;;  %v968_v51 = vrot.slane %v967_v16, 1  ;;  %v3252_v4 = vld [vmem:[#allocation5 + $0x3c0] sm:$0xff]  ;;  %v3254_v5 = vld [vmem:[#allocation5 + $0x3c8] sm:$0xff]  ;;  %v3271_v14 = vld [vmem:[#allocation5 + $0x250] sm:$0xff] }
  0xe6   : > { %v1038_v29 = vrot.slane %v1037_v17, 1  ;;  %v689_v45 = vadd.f32 %v688_v35, %v687_v8  ;;  %v759_v47 = vadd.f32 %v758_v36, %v757_v9  ;;  %v829_v27 = vadd.f32 %v828_v43, %v827_v10  ;;  %v3258_v7 = vld [vmem:[#allocation5 + $0x348] sm:$0xff]  ;;  %v3260_v8 = vld [vmem:[#allocation5 + $0x2d0] sm:$0xff]  ;;  %v3262_v9 = vld [vmem:[#allocation5 + $0x2d8] sm:$0xff] }
  0xe7   : > { %v899_v41 = vadd.f32 %v898_v18, %v897_v11  ;;  %v969_v55 = vadd.f32 %v968_v51, %v967_v16  ;;  %v1437_v54 = vsel %vm1416_vm0, %v619_v50, %v549_v49  ;;  %v2407_v19 = vpack.c.bf16 %v3180_v13, %v3178_v12  ;;  %v3273_v15 = vld [vmem:[#allocation5 + $0x258] sm:$0xff]  ;;  %v3275_v16 = vld [vmem:[#allocation5 + $0x3d0] sm:$0xff]  ;;  %v3298_v49 = vld [vmem:[#allocation5 + $0x3e0] sm:$0xff] }
  0xe8   : > { %v1039_v59 = vadd.f32 %v1038_v29, %v1037_v17  ;;  %v1438_v0 = vsel %vm1418_vm1, %v689_v45, %v1437_v54  ;;  %v2409_v1 = vpack.c.bf16 %v3184_v25, %v3182_v22  ;;  %v2379_v2 = vpack.c.bf16 %v3188_v26, %v3186_v21  ;;  %v3277_v17 = vld [vmem:[#allocation5 + $0x3d8] sm:$0xff]  ;;  %v3279_v21 = vld [vmem:[#allocation5 + $0x350] sm:$0xff]  ;;  %3890 = vst [vmem:[#allocation13_spill] sm:$0xff] %v3298_v49  ;;  %v3300_v50 = vld [vmem:[#allocation5 + $0x3e8] sm:$0xff] }
  0xe9   : > { %v2381_v3 = vpack.c.bf16 %v3192_v33, %v3190_v32  ;;  %v1439_v10 = vsel %vm1420_vm2, %v759_v47, %v1438_v0  ;;  %2408 = vmatprep.subr.bf16.mxu1 %v2407_v19  ;;  %v2411_v11 = vpack.c.bf16 %v3196_v24, %v3194_v23  ;;  %v2383_v13 = vpack.c.bf16 %v3204_v42, %v3202_v38  ;;  %v3281_v26 = vld [vmem:[#allocation5 + $0x358] sm:$0xff]  ;;  %v3283_v32 = vld [vmem:[#allocation5 + $0x2e0] sm:$0xff]  ;;  %v3285_v33 = vld [vmem:[#allocation5 + $0x2e8] sm:$0xff] }
  0xea   : > { %v1440_v35 = vsel %vm1422_vm3, %v829_v27, %v1439_v10  ;;  %2380 = vmatprep.subr.bf16.mxu0 %v2379_v2  ;;  %v2385_v36 = vpack.c.bf16 %v3208_v56, %v3206_v39  ;;  %v3294_v38 = vld [vmem:[#allocation5 + $0x260] sm:$0xff]  ;;  %v3296_v42 = vld [vmem:[#allocation5 + $0x268] sm:$0xff]  ;;  %3891 = vst [vmem:[#allocation14_spill] sm:$0xff] %v3300_v50  ;;  %v2387_v56 = vpack.c.bf16 %v3220_v31, %v3218_v52  ;;  %v3313_v27 = vld [vmem:[#allocation5 + $0x2f0] sm:$0xff] }
  0xeb   : > { %v3302_v51 = vld [vmem:[#allocation5 + $0x360] sm:$0xff]  ;;  %v3304_v29 = vld [vmem:[#allocation5 + $0x368] sm:$0xff]  ;;  %v1441_v39 = vsel %vm1424_vm4, %v899_v41, %v1440_v35  ;;  %2382 = vmatpush3.bf16.msra.mxu0 %v2381_v3  ;;  %v2389_v45 = vpack.c.bf16 %v3224_v48, %v3222_v30  ;;  %v3315_v54 = vld [vmem:[#allocation5 + $0x2f8] sm:$0xff]  ;;  %v2391_v30 = vpack.c.bf16 %v3239_v61, %v3237_v60 }
  0xec   : > { %3892 = vst [vmem:[#allocation15_spill] sm:$0xff] %v3302_v51  ;;  %3893 = vst [vmem:[#allocation16_spill] sm:$0xff] %v3304_v29  ;;  %v3317_v19 = vld [vmem:[#allocation5 + $0x270] sm:$0xff]  ;;  %v3319_v41 = vld [vmem:[#allocation5 + $0x278] sm:$0xff]  ;;  %v1442_v52 = vsel %vm1426_vm5, %v969_v55, %v1441_v39  ;;  %2384 = vmatprep.subr.bf16.mxu0 %v2383_v13  ;;  %v3907_v51 = vpack.c.bf16 %v3200_v37, %v3198_v44 }
  0xed   : > { %v3321_v0 = vld [vmem:[#allocation5 + $0x3f0] sm:$0xff]  ;;  %v3330_v2 = vld [vmem:[#allocation5 + $0x3f8] sm:$0xff]  ;;  %v1443_v55 = vsel %vm1428_vm6, %v1039_v59, %v1442_v52  ;;  %v3346_v35 = vld [vmem:[%s2942_s16 + $0x60] sm:$0xff] }
  0xee   : > { %3894 = vst [vmem:[#allocation17_spill] sm:$0xff] %v3321_v0  ;;  %3895 = vst [vmem:[#allocation18_spill] sm:$0xff] %v3330_v2  ;;  %v3333_v3 = vld [vmem:[%s2942_s16 + $0x10] sm:$0xff]  ;;  %v3336_v10 = vld [vmem:[%s2942_s16 + $0x38] sm:$0xff]  ;;  %1638 = vmatmul.mubr.f32.vlgmr.msra.gmra.mrb[0].mxu1 %v1443_v55 }
  0xef   : > { %v3349_v39 = vld [vmem:[%s2942_s16 + $0x88] sm:$0xff]  ;;  %v3352_v31 = vld [vmem:[%s2942_s16 + $0xb0] sm:$0xff]  ;;  %v3363_v61 = vld [vmem:[%s2942_s16 + $0xd8] sm:$0xff]  ;;  %2410 = vmatpush3.bf16.msra.mxu1 %v2409_v1  ;;  %2386 = vmatpush3.bf16.msra.mxu0 %v2385_v36  ;;  %v374_v25 = vunpack.c.h.bf16 %v3333_v3  ;;  %v384_v43 = vunpack.c.h.bf16 %v3336_v10 }
  0xf0   : > { %3896 = vst [vmem:[#allocation19_spill] sm:$0xff] %v3349_v39  ;;  %3897 = vst [vmem:[#allocation20_spill] sm:$0xff] %v3352_v31  ;;  %v3366_v47 = vld [vmem:[%s2942_s16 + $0x100] sm:$0xff]  ;;  %v3369_v48 = vld [vmem:[%s2942_s16 + $0x128] sm:$0xff]  ;;  %2412 = vmatprep.subr.bf16.mxu1 %v2411_v11  ;;  %2388 = vmatprep.subr.bf16.mxu0 %v2387_v56  ;;  %v394_v11 = vunpack.c.h.bf16 %v3346_v35  ;;  %v404_v56 = vunpack.c.h.bf16 %v3349_v39  ;;  %v414_v36 = vunpack.c.h.bf16 %v3352_v31  ;;  %v424_v52 = vunpack.c.h.bf16 %v3363_v61 }
  0xf1   : > { %3898 = vst [vmem:[#allocation21_spill] sm:$0xff] %v3363_v61  ;;  %3899 = vst [vmem:[#allocation22_spill] sm:$0xff] %v3366_v47  ;;  %v3381_v13 = vld [vmem:[%s2942_s16 + $0x150] sm:$0xff]  ;;  %v3384_v59 = vld [vmem:[%s2942_s16 + $0x178] sm:$0xff]  ;;  %v434_v1 = vunpack.c.h.bf16 %v3366_v47  ;;  %v444_v12 = vunpack.c.h.bf16 %v3369_v48  ;;  %v564_v44 = vadd.f32 %v384_v43, %v374_v25 }
  0xf2   : > { %3900 = vst [vmem:[#allocation23_spill] sm:$0xff] %v3369_v48  ;;  %3901 = vst [vmem:[#allocation24_spill] sm:$0xff] %v3381_v13  ;;  %v3387_v22 = vld [vmem:[%s2942_s16 + $0x1a0] sm:$0xff]  ;;  %v3400_v60 = vld [vmem:[%s2942_s16 + $0x1c8] sm:$0xff]  ;;  %v454_v0 = vunpack.c.h.bf16 %v3381_v13  ;;  %v464_v2 = vunpack.c.h.bf16 %v3384_v59  ;;  %v3908_v48 = vpack.c.bf16 %v3212_v57, %v3210_v40  ;;  %v634_v37 = vadd.f32 %v404_v56, %v394_v11 }
  0xf3   : > { %3902 = vst [vmem:[#allocation25_spill] sm:$0xff] %v3384_v59  ;;  %3903 = vst [vmem:[#allocation26_spill] sm:$0xff] %v3387_v22  ;;  %v3403_v55 = vld [vmem:[%s2942_s16 + $0x1f0] sm:$0xff]  ;;  %v3406_v18 = vld [vmem:[%s2942_s16 + $0x218] sm:$0xff]  ;;  %2414 = vmatpush3.bf16.msra.mxu1 %v3907_v51  ;;  %2390 = vmatpush3.bf16.msra.mxu0 %v2389_v45  ;;  %v474_v29 = vunpack.c.h.bf16 %v3387_v22  ;;  %v484_v39 = vunpack.c.h.bf16 %v3400_v60  ;;  %v704_v51 = vadd.f32 %v424_v52, %v414_v36 }
  0xf4   : > { %3904 = vst [vmem:[#allocation27_spill] sm:$0xff] %v3400_v60  ;;  %3905 = vst [vmem:[#allocation28_spill] sm:$0xff] %v3403_v55  ;;  %v3410_v23 = vld [vmem:[%s2942_s16 + $0x240] sm:$0xff]  ;;  %v3413_v24 = vld [vmem:[%s2942_s16 + $0x268] sm:$0xff]  ;;  %v494_v31 = vunpack.c.h.bf16 %v3403_v55  ;;  %v504_v61 = vunpack.c.h.bf16 %v3406_v18  ;;  %2416 = vmatprep.subr.bf16.mxu1 %v3908_v48  ;;  %2392 = vmatprep.subr.bf16.mxu0 %v2391_v30  ;;  %v774_v45 = vadd.f32 %v444_v12, %v434_v1  ;;  %v565_v60 = vrot.slane %v564_v44, 4 }
  0xf5   : > { %3906 = vst [vmem:[#allocation29_spill] sm:$0xff] %v3406_v18  ;;  %v514_v59 = vunpack.c.h.bf16 %v3410_v23  ;;  %v524_v13 = vunpack.c.h.bf16 %v3413_v24  ;;  %v844_v22 = vadd.f32 %v464_v2, %v454_v0  ;;  %v914_v47 = vadd.f32 %v484_v39, %v474_v29 }
  0xf6   : > { %v635_v49 = vrot.slane %v634_v37, 4  ;;  %v984_v55 = vadd.f32 %v504_v61, %v494_v31  ;;  %v3909_v18 = vpack.c.bf16 %v3216_v46, %v3214_v58  ;;  %v3910_v40 = vpack.c.bf16 %v3243_v63, %v3241_v62 }
  0xf7   : > { %v1054_v50 = vadd.f32 %v524_v13, %v514_v59  ;;  %v705_v57 = vrot.slane %v704_v51, 4  ;;  %v775_v30 = vrot.slane %v774_v45, 4  ;;  %v845_v43 = vrot.slane %v844_v22, 4 }
  0xf8   : > { %2418 = vmatpush3.bf16.msra.mxu1 %v3909_v18  ;;  %2394 = vmatpush3.bf16.msra.mxu0 %v3910_v40  ;;  %v915_v48 = vrot.slane %v914_v47, 4  ;;  %v3911_v12 = vpack.c.bf16 %v3228_v53, %v3226_v34  ;;  %v3912_v29 = vpack.c.bf16 %v3262_v9, %v3260_v8  ;;  %v566_v0 = vadd.f32 %v565_v60, %v564_v44 }
  0xf9   : > { %v636_v31 = vadd.f32 %v635_v49, %v634_v37  ;;  %v985_v58 = vrot.slane %v984_v55, 4  ;;  %v1055_v46 = vrot.slane %v1054_v50, 4  ;;  %v706_v18 = vadd.f32 %v705_v57, %v704_v51  ;;  %v1279_v51 = vld [vmem:[#allocation5 + $0x370] sm:$0xff] }
  0xfa   : > { %2420 = vmatprep.subr.bf16.mxu1 %v3911_v12  ;;  %2396 = vmatprep.subr.bf16.mxu0 %v3912_v29  ;;  %v776_v2 = vadd.f32 %v775_v30, %v774_v45  ;;  %v846_v62 = vadd.f32 %v845_v43, %v844_v22  ;;  %v916_v63 = vadd.f32 %v915_v48, %v914_v47  ;;  %v567_v13 = vrot.slane %v566_v0, 2  ;;  %v1280_v45 = vld [vmem:[#allocation5 + $0x378] sm:$0xff] }
  0xfb   : > { %v637_v61 = vrot.slane %v636_v31, 2  ;;  %v986_v39 = vadd.f32 %v985_v58, %v984_v55  ;;  %v1056_v59 = vadd.f32 %v1055_v46, %v1054_v50  ;;  %v3913_v34 = vpack.c.bf16 %v3235_v28, %v3233_v20 }
  0xfc   : > { %v3914_v53 = vpack.c.bf16 %v3273_v15, %v3271_v14  ;;  %v707_v8 = vrot.slane %v706_v18, 2  ;;  %v777_v9 = vrot.slane %v776_v2, 2  ;;  %v847_v49 = vrot.slane %v846_v62, 2 }
  0xfd   : > { %2422 = vmatpush3.bf16.msra.mxu1 %v3913_v34  ;;  %v917_v60 = vrot.slane %v916_v63, 2  ;;  %v3915_v52 = vpack.c.bf16 %v3254_v5, %v3252_v4  ;;  %v3916_v47 = vpack.c.bf16 %v3285_v33, %v3283_v32  ;;  %v568_v50 = vadd.f32 %v567_v13, %v566_v0  ;;  %v3929_v34 = vld [vmem:[#allocation22_spill] sm:$0xff] }
  0xfe   : > { %2398 = vmatpush3.bf16.msra.mxu0 %v3914_v53  ;;  %v638_v55 = vadd.f32 %v637_v61, %v636_v31  ;;  %v987_v20 = vrot.slane %v986_v39, 2  ;;  %v1057_v28 = vrot.slane %v1056_v59, 2  ;;  %v708_v22 = vadd.f32 %v707_v8, %v706_v18  ;;  %v3927_v61 = vld [vmem:[#allocation20_spill] sm:$0xff]  ;;  %v3930_v53 = vld [vmem:[#allocation23_spill] sm:$0xff] }
  0xff   : > { %2424 = vmatprep.subr.bf16.mxu1 %v3915_v52  ;;  %2400 = vmatprep.subr.bf16.mxu0 %v3916_v47  ;;  %v778_v25 = vadd.f32 %v777_v9, %v776_v2  ;;  %v848_v14 = vadd.f32 %v847_v49, %v846_v62  ;;  %v918_v15 = vadd.f32 %v917_v60, %v916_v63  ;;  %v569_v1 = vrot.slane %v568_v50, 1  ;;  %v3923_v2 = vld [vmem:[#allocation14_spill] sm:$0xff]  ;;  %v3924_v62 = vld [vmem:[#allocation13_spill] sm:$0xff]  ;;  %v3931_v8 = vld [vmem:[#allocation24_spill] sm:$0xff] }
 0x100   : > { %v639_v36 = vrot.slane %v638_v55, 1  ;;  %v988_v11 = vadd.f32 %v987_v20, %v986_v39  ;;  %v1058_v56 = vadd.f32 %v1057_v28, %v1056_v59  ;;  %v3917_v4 = vpack.c.bf16 %v3258_v7, %v3256_v6  ;;  %v3932_v49 = vld [vmem:[#allocation25_spill] sm:$0xff]  ;;  %v3933_v52 = vld [vmem:[#allocation26_spill] sm:$0xff]  ;;  %v3935_v20 = vld [vmem:[#allocation16_spill] sm:$0xff] }
 0x101   : > { %v3918_v5 = vpack.c.bf16 %v3296_v42, %v3294_v38  ;;  %v709_v32 = vrot.slane %v708_v22, 1  ;;  %v779_v33 = vrot.slane %v778_v25, 1  ;;  %v849_v44 = vrot.slane %v848_v14, 1  ;;  %v3936_v28 = vld [vmem:[#allocation15_spill] sm:$0xff] }
 0x102   : > { %2426 = vmatpush3.bf16.msra.mxu1 %v3917_v4  ;;  %v919_v37 = vrot.slane %v918_v15, 1  ;;  %v3919_v40 = vpack.c.bf16 %v3277_v17, %v3275_v16  ;;  %v3920_v57 = vpack.c.bf16 %v3315_v54, %v3313_v27  ;;  %v570_v6 = vadd.f32 %v569_v1, %v568_v50  ;;  %v3934_v50 = vld [vmem:[#allocation27_spill] sm:$0xff]  ;;  %v3939_v1 = vld [vmem:[#allocation29_spill] sm:$0xff] }
 0x103   : > { %2402 = vmatpush3.bf16.msra.mxu0 %v3918_v5  ;;  %v640_v7 = vadd.f32 %v639_v36, %v638_v55  ;;  %v989_v30 = vrot.slane %v988_v11, 1  ;;  %v1059_v43 = vrot.slane %v1058_v56, 1  ;;  %v710_v38 = vadd.f32 %v709_v32, %v708_v22  ;;  %v3941_v4 = vld [vmem:[#allocation17_spill] sm:$0xff] }
 0x104   : > { %2428 = vmatprep.subr.bf16.mxu1 %v3919_v40  ;;  %2404 = vmatprep.subr.bf16.mxu0 %v3920_v57  ;;  %v780_v42 = vadd.f32 %v779_v33, %v778_v25  ;;  %v850_v48 = vadd.f32 %v849_v44, %v848_v14  ;;  %v920_v12 = vadd.f32 %v919_v37, %v918_v15  ;;  %v373_v54 = vunpack.c.l.bf16 %v3333_v3  ;;  %v3938_v14 = vld [vmem:[#allocation28_spill] sm:$0xff] }
 0x105   : > { %v990_v29 = vadd.f32 %v989_v30, %v988_v11  ;;  %v1060_v0 = vadd.f32 %v1059_v43, %v1058_v56  ;;  %v1458_v31 = vsel %vm1416_vm0, %v640_v7, %v570_v6  ;;  %v2437_v58 = vpack.c.bf16 %v1280_v45, %v1279_v51  ;;  %v3940_v56 = vld [vmem:[#allocation18_spill] sm:$0xff] }
 0x106   : > { %v3921_v16 = vpack.c.bf16 %v3281_v26, %v3279_v21  ;;  %v3922_v17 = vpack.c.bf16 %v3319_v41, %v3317_v19  ;;  %v1459_v27 = vsel %vm1418_vm1, %v710_v38, %v1458_v31  ;;  %v383_v46 = vunpack.c.l.bf16 %v3336_v10  ;;  %v3926_v21 = vld [vmem:[#allocation19_spill] sm:$0xff]  ;;  %v3928_v19 = vld [vmem:[#allocation21_spill] sm:$0xff] }
 0x107   : > { %v393_v18 = vunpack.c.l.bf16 %v3346_v35  ;;  %v3925_v63 = vpack.c.bf16 %v3923_v2, %v3924_v62  ;;  %v1460_v13 = vsel %vm1420_vm2, %v780_v42, %v1459_v27  ;;  %v403_v26 = vunpack.c.l.bf16 %v3926_v21 }
 0x108   : > { %2430 = vmatpush3.bf16.msra.mxu1 %v3921_v16  ;;  %2406 = vmatpush3.bf16.msra.mxu0 %v3922_v17  ;;  %v413_v39 = vunpack.c.l.bf16 %v3927_v61  ;;  %v423_v41 = vunpack.c.l.bf16 %v3928_v19  ;;  %v1461_v59 = vsel %vm1422_vm3, %v850_v48, %v1460_v13  ;;  %v433_v3 = vunpack.c.l.bf16 %v3929_v34 }
 0x109   : > { %2432 = vmatprep.subr.bf16.mxu1 %v3925_v63  ;;  %v443_v10 = vunpack.c.l.bf16 %v3930_v53  ;;  %v453_v35 = vunpack.c.l.bf16 %v3931_v8  ;;  %v1462_v9 = vsel %vm1424_vm4, %v920_v12, %v1461_v59  ;;  %v463_v60 = vunpack.c.l.bf16 %v3932_v49 }
 0x10a   : > { %v473_v47 = vunpack.c.l.bf16 %v3933_v52  ;;  %v483_v55 = vunpack.c.l.bf16 %v3934_v50  ;;  %v3937_v22 = vpack.c.bf16 %v3935_v20, %v3936_v28  ;;  %v1463_v25 = vsel %vm1426_vm5, %v990_v29, %v1462_v9  ;;  %v1313_v52 = vld [vmem:[#allocation5 + $0x480] sm:$0xff] }
 0x10b   : > { %v493_v15 = vunpack.c.l.bf16 %v3938_v14  ;;  %v503_v36 = vunpack.c.l.bf16 %v3939_v1  ;;  %v513_v11 = vunpack.c.l.bf16 %v3410_v23  ;;  %v3942_v5 = vpack.c.bf16 %v3940_v56, %v3941_v4  ;;  %v3516_v14 = vld [vmem:[%s2942_s16 + $0x68] sm:$0xff]  ;;  %v3519_v56 = vld [vmem:[%s2942_s16 + $0x90] sm:$0xff]  ;;  %v3522_v4 = vld [vmem:[%s2942_s16 + $0xb8] sm:$0xff] }
 0x10c   : > { %2434 = vmatpush3.bf16.msra.mxu1 %v3937_v22  ;;  %v1464_v32 = vsel %vm1428_vm6, %v1060_v0, %v1463_v25  ;;  %v523_v33 = vunpack.c.l.bf16 %v3413_v24  ;;  %v557_v44 = vadd.f32 %v383_v46, %v373_v54  ;;  %v627_v37 = vadd.f32 %v403_v26, %v393_v18  ;;  %v3510_v22 = vld [vmem:[%s2942_s16 + $0x18] sm:$0xff]  ;;  %v3513_v25 = vld [vmem:[%s2942_s16 + $0x40] sm:$0xff] }
 0x10d   : > { %2436 = vmatprep.subr.bf16.mxu1 %v3942_v5  ;;  %1707 = vmatprep.mubr.f32.mxu0 %v1464_v32  ;;  %v697_v51 = vadd.f32 %v423_v41, %v413_v39  ;;  %v767_v45 = vadd.f32 %v443_v10, %v433_v3  ;;  %v837_v40 = vadd.f32 %v463_v60, %v453_v35  ;;  %v3525_v5 = vld [vmem:[%s2942_s16 + $0xe0] sm:$0xff] }
 0x10e   : > { %v907_v57 = vadd.f32 %v483_v55, %v473_v47  ;;  %v558_v6 = vrot.slane %v557_v44, 4  ;;  %v628_v7 = vrot.slane %v627_v37, 4  ;;  %v977_v30 = vadd.f32 %v503_v36, %v493_v15  ;;  %v1314_v47 = vld [vmem:[#allocation5 + $0x488] sm:$0xff] }
 0x10f   : > { %v1047_v43 = vadd.f32 %v523_v33, %v513_v11  ;;  %v698_v23 = vrot.slane %v697_v51, 4  ;;  %v768_v38 = vrot.slane %v767_v45, 4  ;;  %v838_v42 = vrot.slane %v837_v40, 4 }
 0x110   : > { %2438 = vmatpush3.bf16.msra.mxu1 %v2437_v58  ;;  %v908_v48 = vrot.slane %v907_v57, 4  ;;  %v559_v12 = vadd.f32 %v558_v6, %v557_v44  ;;  %v629_v29 = vadd.f32 %v628_v7, %v627_v37  ;;  %v978_v0 = vrot.slane %v977_v30, 4  ;;  %v3539_v6 = vld [vmem:[%s2942_s16 + $0x180] sm:$0xff]  ;;  %v3542_v7 = vld [vmem:[%s2942_s16 + $0x1a8] sm:$0xff] }
 0x111   : > { %v1048_v24 = vrot.slane %v1047_v43, 4  ;;  %v699_v31 = vadd.f32 %v698_v23, %v697_v51  ;;  %v769_v16 = vadd.f32 %v768_v38, %v767_v45  ;;  %v839_v17 = vadd.f32 %v838_v42, %v837_v40  ;;  %v3529_v51 = vld [vmem:[%s2942_s16 + $0x108] sm:$0xff]  ;;  %v3532_v45 = vld [vmem:[%s2942_s16 + $0x130] sm:$0xff]  ;;  %v3535_v40 = vld [vmem:[%s2942_s16 + $0x158] sm:$0xff] }
 0x112   : > { %v909_v27 = vadd.f32 %v908_v48, %v907_v57  ;;  %v560_v54 = vrot.slane %v559_v12, 2  ;;  %v630_v46 = vrot.slane %v629_v29, 2  ;;  %v979_v18 = vadd.f32 %v978_v0, %v977_v30  ;;  %v3545_v30 = vld [vmem:[%s2942_s16 + $0x1d0] sm:$0xff]  ;;  %v3552_v48 = vld [vmem:[%s2942_s16 + $0x1f8] sm:$0xff] }
 0x113   : > { %v1049_v2 = vadd.f32 %v1048_v24, %v1047_v43  ;;  %v700_v62 = vrot.slane %v699_v31, 2  ;;  %v770_v63 = vrot.slane %v769_v16, 2  ;;  %v840_v13 = vrot.slane %v839_v17, 2 }
 0x114   : > { %v910_v58 = vrot.slane %v909_v27, 2  ;;  %v561_v21 = vadd.f32 %v560_v54, %v559_v12  ;;  %v631_v26 = vadd.f32 %v630_v46, %v629_v29  ;;  %v980_v61 = vrot.slane %v979_v18, 2  ;;  %v3555_v12 = vld [vmem:[%s2942_s16 + $0x220] sm:$0xff]  ;;  %v3558_v29 = vld [vmem:[%s2942_s16 + $0x248] sm:$0xff] }
 0x115   : > { %v1050_v39 = vrot.slane %v1049_v2, 2  ;;  %v701_v19 = vadd.f32 %v700_v62, %v699_v31  ;;  %v771_v41 = vadd.f32 %v770_v63, %v769_v16  ;;  %v841_v59 = vadd.f32 %v840_v13, %v839_v17  ;;  %v3565_v17 = vld [vmem:[%s2942_s16 + $0x270] sm:$0xff] }
 0x116   : > { %v911_v34 = vadd.f32 %v910_v58, %v909_v27  ;;  %v562_v3 = vrot.slane %v561_v21, 1  ;;  %v632_v53 = vrot.slane %v631_v26, 1  ;;  %v981_v10 = vadd.f32 %v980_v61, %v979_v18 }
 0x117   : > { %v1051_v8 = vadd.f32 %v1050_v39, %v1049_v2  ;;  %v702_v35 = vrot.slane %v701_v19, 1  ;;  %v772_v9 = vrot.slane %v771_v41, 1  ;;  %v842_v49 = vrot.slane %v841_v59, 1 }
 0x118   : > { %v912_v60 = vrot.slane %v911_v34, 1  ;;  %v563_v50 = vadd.f32 %v562_v3, %v561_v21  ;;  %v633_v55 = vadd.f32 %v632_v53, %v631_v26  ;;  %v982_v20 = vrot.slane %v981_v10, 1 }
 0x119   : > { %v1052_v28 = vrot.slane %v1051_v8, 1  ;;  %v703_v15 = vadd.f32 %v702_v35, %v701_v19  ;;  %v773_v1 = vadd.f32 %v772_v9, %v771_v41  ;;  %v843_v36 = vadd.f32 %v842_v49, %v841_v59 }
 0x11a   : > { %v913_v11 = vadd.f32 %v912_v60, %v911_v34  ;;  %v983_v32 = vadd.f32 %v982_v20, %v981_v10  ;;  %v1451_v44 = vsel %vm1416_vm0, %v633_v55, %v563_v50  ;;  %v2439_v37 = vpack.c.bf16 %v1314_v47, %v1313_v52 }
 0x11b   : > { %v1053_v33 = vadd.f32 %v1052_v28, %v1051_v8  ;;  %v1452_v57 = vsel %vm1418_vm1, %v703_v15, %v1451_v44  ;;  %v376_v43 = vunpack.c.h.bf16 %v3510_v22  ;;  %v386_v23 = vunpack.c.h.bf16 %v3513_v25 }
 0x11c   : > { %v396_v38 = vunpack.c.h.bf16 %v3516_v14  ;;  %v1453_v42 = vsel %vm1420_vm2, %v773_v1, %v1452_v57  ;;  %2440 = vmatprep.subr.bf16.mxu0 %v2439_v37  ;;  %v406_v0 = vunpack.c.h.bf16 %v3519_v56  ;;  %v416_v24 = vunpack.c.h.bf16 %v3522_v4 }
 0x11d   : > { %v426_v31 = vunpack.c.h.bf16 %v3525_v5  ;;  %v1454_v16 = vsel %vm1422_vm3, %v843_v36, %v1453_v42  ;;  %v436_v27 = vunpack.c.h.bf16 %v3529_v51  ;;  %v446_v54 = vunpack.c.h.bf16 %v3532_v45 }
 0x11e   : > { %v456_v46 = vunpack.c.h.bf16 %v3535_v40  ;;  %v1455_v18 = vsel %vm1424_vm4, %v913_v11, %v1454_v16  ;;  %v466_v2 = vunpack.c.h.bf16 %v3539_v6  ;;  %v476_v62 = vunpack.c.h.bf16 %v3542_v7 }
 0x11f   : > { %v486_v63 = vunpack.c.h.bf16 %v3545_v30  ;;  %v1456_v13 = vsel %vm1426_vm5, %v983_v32, %v1455_v18  ;;  %v496_v58 = vunpack.c.h.bf16 %v3552_v48  ;;  %v506_v21 = vunpack.c.h.bf16 %v3555_v12 }
 0x120   : > { %v516_v26 = vunpack.c.h.bf16 %v3558_v29  ;;  %v1457_v61 = vsel %vm1428_vm6, %v1053_v33, %v1456_v13  ;;  %v526_v39 = vunpack.c.h.bf16 %v3565_v17  ;;  %v578_v19 = vadd.f32 %v386_v23, %v376_v43 }
 0x121   : > { %v648_v41 = vadd.f32 %v406_v0, %v396_v38  ;;  %1708 = vmatmul.mubr.f32.vlgmr.msra.gmra.mrb[2].mxu0 %v1457_v61  ;;  %v718_v59 = vadd.f32 %v426_v31, %v416_v24  ;;  %v788_v34 = vadd.f32 %v446_v54, %v436_v27  ;;  %v858_v3 = vadd.f32 %v466_v2, %v456_v46  ;;  %v1297_v61 = vld [vmem:[#allocation5 + $0x400] sm:$0xff] }
 0x122   : > { %v928_v53 = vadd.f32 %v486_v63, %v476_v62  ;;  %v579_v10 = vrot.slane %v578_v19, 4  ;;  %v998_v35 = vadd.f32 %v506_v21, %v496_v58  ;;  %v1068_v9 = vadd.f32 %v526_v39, %v516_v26  ;;  %v1298_v39 = vld [vmem:[#allocation5 + $0x408] sm:$0xff] }
 0x123   : > { %v649_v8 = vrot.slane %v648_v41, 4  ;;  %v719_v49 = vrot.slane %v718_v59, 4  ;;  %v789_v60 = vrot.slane %v788_v34, 4  ;;  %v859_v52 = vrot.slane %v858_v3, 4 }
 0x124   : > { %v929_v47 = vrot.slane %v928_v53, 4  ;;  %v580_v50 = vadd.f32 %v579_v10, %v578_v19  ;;  %v999_v20 = vrot.slane %v998_v35, 4  ;;  %v1069_v28 = vrot.slane %v1068_v9, 4 }
 0x125   : > { %v650_v55 = vadd.f32 %v649_v8, %v648_v41  ;;  %v720_v15 = vadd.f32 %v719_v49, %v718_v59  ;;  %v790_v1 = vadd.f32 %v789_v60, %v788_v34  ;;  %v860_v36 = vadd.f32 %v859_v52, %v858_v3 }
 0x126   : > { %v930_v11 = vadd.f32 %v929_v47, %v928_v53  ;;  %v581_v32 = vrot.slane %v580_v50, 2  ;;  %v1000_v44 = vadd.f32 %v999_v20, %v998_v35  ;;  %v1070_v37 = vadd.f32 %v1069_v28, %v1068_v9 }
 0x127   : > { %v651_v33 = vrot.slane %v650_v55, 2  ;;  %v721_v57 = vrot.slane %v720_v15, 2  ;;  %v791_v43 = vrot.slane %v790_v1, 2  ;;  %v861_v23 = vrot.slane %v860_v36, 2 }
 0x128   : > { %v931_v38 = vrot.slane %v930_v11, 2  ;;  %v582_v42 = vadd.f32 %v581_v32, %v580_v50  ;;  %v1001_v24 = vrot.slane %v1000_v44, 2  ;;  %v1071_v31 = vrot.slane %v1070_v37, 2 }
 0x129   : > { %v652_v0 = vadd.f32 %v651_v33, %v650_v55  ;;  %v722_v16 = vadd.f32 %v721_v57, %v720_v15  ;;  %v792_v27 = vadd.f32 %v791_v43, %v790_v1  ;;  %v862_v54 = vadd.f32 %v861_v23, %v860_v36 }
 0x12a   : > { %v932_v46 = vadd.f32 %v931_v38, %v930_v11  ;;  %v583_v18 = vrot.slane %v582_v42, 1  ;;  %v1002_v62 = vadd.f32 %v1001_v24, %v1000_v44  ;;  %v1072_v63 = vadd.f32 %v1071_v31, %v1070_v37 }
 0x12b   : > { %v653_v2 = vrot.slane %v652_v0, 1  ;;  %v723_v13 = vrot.slane %v722_v16, 1  ;;  %v793_v58 = vrot.slane %v792_v27, 1  ;;  %v863_v21 = vrot.slane %v862_v54, 1 }
 0x12c   : > { %v933_v26 = vrot.slane %v932_v46, 1  ;;  %v584_v19 = vadd.f32 %v583_v18, %v582_v42  ;;  %v1003_v59 = vrot.slane %v1002_v62, 1  ;;  %v1073_v34 = vrot.slane %v1072_v63, 1 }
 0x12d   : > { %v654_v41 = vadd.f32 %v653_v2, %v652_v0  ;;  %v724_v3 = vadd.f32 %v723_v13, %v722_v16  ;;  %v794_v53 = vadd.f32 %v793_v58, %v792_v27  ;;  %v864_v10 = vadd.f32 %v863_v21, %v862_v54 }
 0x12e   : > { %v934_v8 = vadd.f32 %v933_v26, %v932_v46  ;;  %v1004_v35 = vadd.f32 %v1003_v59, %v1002_v62  ;;  %v1074_v9 = vadd.f32 %v1073_v34, %v1072_v63  ;;  %v2441_v60 = vpack.c.bf16 %v1298_v39, %v1297_v61 }
 0x12f   : > { %v1472_v49 = vsel %vm1416_vm0, %v654_v41, %v584_v19  ;;  %v375_v47 = vunpack.c.l.bf16 %v3510_v22  ;;  %v385_v50 = vunpack.c.l.bf16 %v3513_v25  ;;  %v395_v55 = vunpack.c.l.bf16 %v3516_v14 }
 0x130   : > { %v1473_v52 = vsel %vm1418_vm1, %v724_v3, %v1472_v49  ;;  %2442 = vmatpush3.bf16.msra.mxu0 %v2441_v60  ;;  %v405_v28 = vunpack.c.l.bf16 %v3519_v56  ;;  %v415_v15 = vunpack.c.l.bf16 %v3522_v4  ;;  %v425_v1 = vunpack.c.l.bf16 %v3525_v5 }
 0x131   : > { %v1474_v20 = vsel %vm1420_vm2, %v794_v53, %v1473_v52  ;;  %v435_v11 = vunpack.c.l.bf16 %v3529_v51  ;;  %v445_v32 = vunpack.c.l.bf16 %v3532_v45  ;;  %v455_v22 = vunpack.c.l.bf16 %v3535_v40 }
 0x132   : > { %v1475_v36 = vsel %vm1422_vm3, %v864_v10, %v1474_v20  ;;  %v465_v14 = vunpack.c.l.bf16 %v3539_v6  ;;  %v475_v33 = vunpack.c.l.bf16 %v3542_v7  ;;  %v485_v56 = vunpack.c.l.bf16 %v3545_v30  ;;  %v3603_v20 = vld [vmem:[#allocation5 + $0x4a0] sm:$0xff] }
 0x133   : > { %v1476_v25 = vsel %vm1424_vm4, %v934_v8, %v1475_v36  ;;  %v495_v5 = vunpack.c.l.bf16 %v3552_v48  ;;  %v505_v44 = vunpack.c.l.bf16 %v3555_v12  ;;  %v515_v51 = vunpack.c.l.bf16 %v3558_v29 }
 0x134   : > { %v1477_v4 = vsel %vm1426_vm5, %v1004_v35, %v1476_v25  ;;  %v525_v40 = vunpack.c.l.bf16 %v3565_v17  ;;  %v571_v37 = vadd.f32 %v385_v50, %v375_v47  ;;  %v641_v57 = vadd.f32 %v405_v28, %v395_v55  ;;  %v1315_v35 = vld [vmem:[#allocation5 + $0x490] sm:$0xff]  ;;  %v1300_v55 = vld [vmem:[#allocation5 + $0x418] sm:$0xff]  ;;  %v1318_v28 = vld [vmem:[#allocation5 + $0x4a8] sm:$0xff] }
 0x135   : > { %v1478_v45 = vsel %vm1428_vm6, %v1074_v9, %v1477_v4  ;;  %v711_v6 = vadd.f32 %v425_v1, %v415_v15  ;;  %v781_v43 = vadd.f32 %v445_v32, %v435_v11  ;;  %v851_v7 = vadd.f32 %v465_v14, %v455_v22  ;;  %v1316_v9 = vld [vmem:[#allocation5 + $0x498] sm:$0xff]  ;;  %v1299_v50 = vld [vmem:[#allocation5 + $0x410] sm:$0xff]  ;;  %v3605_v15 = vld [vmem:[#allocation5 + $0x420] sm:$0xff] }
 0x136   : > { %1777 = vmatprep.mubr.f32.mxu1 %v1478_v45  ;;  %v921_v23 = vadd.f32 %v485_v56, %v475_v33  ;;  %v572_v30 = vrot.slane %v571_v37, 4  ;;  %v642_v38 = vrot.slane %v641_v57, 4  ;;  %v991_v42 = vadd.f32 %v505_v44, %v495_v5  ;;  %v3607_v1 = vld [vmem:[#allocation5 + $0x428] sm:$0xff]  ;;  %v3609_v25 = vld [vmem:[#allocation5 + $0x4b0] sm:$0xff]  ;;  %v3611_v14 = vld [vmem:[#allocation5 + $0x4b8] sm:$0xff] }
 0x137   : > { %v1061_v0 = vadd.f32 %v525_v40, %v515_v51  ;;  %v712_v48 = vrot.slane %v711_v6, 4  ;;  %v782_v24 = vrot.slane %v781_v43, 4  ;;  %v852_v12 = vrot.slane %v851_v7, 4  ;;  %v3613_v33 = vld [vmem:[#allocation5 + $0x430] sm:$0xff]  ;;  %v3615_v56 = vld [vmem:[#allocation5 + $0x438] sm:$0xff]  ;;  %v3617_v4 = vld [vmem:[#allocation5 + $0x4c0] sm:$0xff] }
 0x138   : > { %v922_v31 = vrot.slane %v921_v23, 4  ;;  %v573_v29 = vadd.f32 %v572_v30, %v571_v37  ;;  %v643_v16 = vadd.f32 %v642_v38, %v641_v57  ;;  %v992_v27 = vrot.slane %v991_v42, 4  ;;  %v3619_v5 = vld [vmem:[#allocation5 + $0x4c8] sm:$0xff]  ;;  %v3621_v37 = vld [vmem:[#allocation5 + $0x440] sm:$0xff]  ;;  %v3627_v38 = vld [vmem:[#allocation5 + $0x4d8] sm:$0xff] }
 0x139   : > { %v1062_v54 = vrot.slane %v1061_v0, 4  ;;  %v713_v17 = vadd.f32 %v712_v48, %v711_v6  ;;  %v783_v46 = vadd.f32 %v782_v24, %v781_v43  ;;  %v853_v18 = vadd.f32 %v852_v12, %v851_v7  ;;  %v3623_v57 = vld [vmem:[#allocation5 + $0x448] sm:$0xff]  ;;  %v3625_v6 = vld [vmem:[#allocation5 + $0x4d0] sm:$0xff] }
 0x13a   : > { %v923_v2 = vadd.f32 %v922_v31, %v921_v23  ;;  %v574_v62 = vrot.slane %v573_v29, 2  ;;  %v644_v63 = vrot.slane %v643_v16, 2  ;;  %v993_v13 = vadd.f32 %v992_v27, %v991_v42  ;;  %v3629_v42 = vld [vmem:[#allocation5 + $0x450] sm:$0xff]  ;;  %v3638_v27 = vld [vmem:[#allocation5 + $0x460] sm:$0xff] }
 0x13b   : > { %v1063_v58 = vadd.f32 %v1062_v54, %v1061_v0  ;;  %v714_v21 = vrot.slane %v713_v17, 2  ;;  %v784_v26 = vrot.slane %v783_v46, 2  ;;  %v854_v61 = vrot.slane %v853_v18, 2  ;;  %v3631_v0 = vld [vmem:[#allocation5 + $0x458] sm:$0xff]  ;;  %v3641_v54 = vld [vmem:[%s2942_s16 + $0x20] sm:$0xff] }
 0x13c   : > { %v924_v39 = vrot.slane %v923_v2, 2  ;;  %v575_v19 = vadd.f32 %v574_v62, %v573_v29  ;;  %v645_v41 = vadd.f32 %v644_v63, %v643_v16  ;;  %v994_v59 = vrot.slane %v993_v13, 2  ;;  %v3634_v29 = vld [vmem:[#allocation5 + $0x4e0] sm:$0xff]  ;;  %v3636_v16 = vld [vmem:[#allocation5 + $0x4e8] sm:$0xff] }
 0x13d   : > { %v1064_v34 = vrot.slane %v1063_v58, 2  ;;  %v715_v3 = vadd.f32 %v714_v21, %v713_v17  ;;  %v785_v53 = vadd.f32 %v784_v26, %v783_v46  ;;  %v855_v10 = vadd.f32 %v854_v61, %v853_v18  ;;  %v3644_v17 = vld [vmem:[%s2942_s16 + $0x48] sm:$0xff]  ;;  %v3657_v21 = vld [vmem:[%s2942_s16 + $0x70] sm:$0xff] }
 0x13e   : > { %v925_v8 = vadd.f32 %v924_v39, %v923_v2  ;;  %v576_v49 = vrot.slane %v575_v19, 1  ;;  %v646_v60 = vrot.slane %v645_v41, 1  ;;  %v995_v52 = vadd.f32 %v994_v59, %v993_v13  ;;  %v3650_v63 = vld [vmem:[#allocation5 + $0x468] sm:$0xff]  ;;  %v3652_v13 = vld [vmem:[#allocation5 + $0x4f0] sm:$0xff]  ;;  %v3668_v59 = vld [vmem:[#allocation5 + $0x478] sm:$0xff] }
 0x13f   : > { %v1065_v47 = vadd.f32 %v1064_v34, %v1063_v58  ;;  %v716_v36 = vrot.slane %v715_v3, 1  ;;  %v786_v11 = vrot.slane %v785_v53, 1  ;;  %v856_v32 = vrot.slane %v855_v10, 1  ;;  %v3654_v58 = vld [vmem:[#allocation5 + $0x4f8] sm:$0xff] }
 0x140   : > { %v926_v22 = vrot.slane %v925_v8, 1  ;;  %v577_v44 = vadd.f32 %v576_v49, %v575_v19  ;;  %v647_v51 = vadd.f32 %v646_v60, %v645_v41  ;;  %v996_v45 = vrot.slane %v995_v52, 1  ;;  %v3666_v41 = vld [vmem:[#allocation5 + $0x470] sm:$0xff]  ;;  %v3671_v34 = vld [vmem:[%s2942_s16 + $0x98] sm:$0xff] }
 0x141   : > { %v1066_v40 = vrot.slane %v1065_v47, 1  ;;  %v717_v43 = vadd.f32 %v716_v36, %v715_v3  ;;  %v787_v7 = vadd.f32 %v786_v11, %v785_v53  ;;  %v857_v23 = vadd.f32 %v856_v32, %v855_v10  ;;  %v3687_v49 = vld [vmem:[%s2942_s16 + $0x110] sm:$0xff]  ;;  %v3712_v11 = vld [vmem:[%s2942_s16 + $0x1d8] sm:$0xff]  ;;  %v3715_v32 = vld [vmem:[%s2942_s16 + $0x200] sm:$0xff] }
 0x142   : > { %v927_v30 = vadd.f32 %v926_v22, %v925_v8  ;;  %v997_v48 = vadd.f32 %v996_v45, %v995_v52  ;;  %v1465_v12 = vsel %vm1416_vm0, %v647_v51, %v577_v44  ;;  %v2443_v31 = vpack.c.bf16 %v1316_v9, %v1315_v35  ;;  %v3681_v35 = vld [vmem:[%s2942_s16 + $0xc0] sm:$0xff]  ;;  %v3684_v9 = vld [vmem:[%s2942_s16 + $0xe8] sm:$0xff]  ;;  %v3709_v36 = vld [vmem:[%s2942_s16 + $0x1b0] sm:$0xff] }
 0x143   : > { %v1067_v24 = vadd.f32 %v1066_v40, %v1065_v47  ;;  %v1466_v46 = vsel %vm1418_vm1, %v717_v43, %v1465_v12  ;;  %v2445_v18 = vpack.c.bf16 %v1300_v55, %v1299_v50  ;;  %v2447_v2 = vpack.c.bf16 %v1318_v28, %v3603_v20  ;;  %v3697_v55 = vld [vmem:[%s2942_s16 + $0x138] sm:$0xff]  ;;  %v3700_v20 = vld [vmem:[%s2942_s16 + $0x160] sm:$0xff]  ;;  %v3703_v28 = vld [vmem:[%s2942_s16 + $0x188] sm:$0xff] }
 0x144   : > { %v2449_v62 = vpack.c.bf16 %v3607_v1, %v3605_v15  ;;  %v1467_v26 = vsel %vm1420_vm2, %v787_v7, %v1466_v46  ;;  %2444 = vmatprep.subr.bf16.mxu0 %v2443_v31  ;;  %v2451_v61 = vpack.c.bf16 %v3611_v14, %v3609_v25  ;;  %v2453_v39 = vpack.c.bf16 %v3615_v56, %v3613_v33  ;;  %v3721_v33 = vld [vmem:[%s2942_s16 + $0x228] sm:$0xff]  ;;  %v3724_v56 = vld [vmem:[%s2942_s16 + $0x250] sm:$0xff] }
 0x145   : > { %v2455_v19 = vpack.c.bf16 %v3619_v5, %v3617_v4  ;;  %v1468_v3 = vsel %vm1422_vm3, %v857_v23, %v1467_v26  ;;  %2446 = vmatpush3.bf16.msra.mxu0 %v2445_v18  ;;  %v378_v22 = vunpack.c.h.bf16 %v3641_v54  ;;  %v388_v25 = vunpack.c.h.bf16 %v3644_v17  ;;  %3943 = vst [vmem:[#allocation14_spill] sm:$0xff] %v3724_v56  ;;  %v3727_v4 = vld [vmem:[%s2942_s16 + $0x278] sm:$0xff] }
 0x146   : > { %v1469_v60 = vsel %vm1424_vm4, %v927_v30, %v1468_v3  ;;  %2448 = vmatprep.subr.bf16.mxu0 %v2447_v2  ;;  %3944 = vst [vmem:[#allocation13_spill] sm:$0xff] %v3727_v4  ;;  %v398_v5 = vunpack.c.h.bf16 %v3657_v21  ;;  %v408_v44 = vunpack.c.h.bf16 %v3671_v34  ;;  %v418_v51 = vunpack.c.h.bf16 %v3681_v35 }
 0x147   : > { %v1470_v15 = vsel %vm1426_vm5, %v997_v48, %v1469_v60  ;;  %v428_v45 = vunpack.c.h.bf16 %v3684_v9  ;;  %v438_v40 = vunpack.c.h.bf16 %v3687_v49  ;;  %v448_v43 = vunpack.c.h.bf16 %v3697_v55 }
 0x148   : > { %v1471_v14 = vsel %vm1428_vm6, %v1067_v24, %v1470_v15  ;;  %v458_v7 = vunpack.c.h.bf16 %v3700_v20  ;;  %v468_v23 = vunpack.c.h.bf16 %v3703_v28  ;;  %v478_v30 = vunpack.c.h.bf16 %v3709_v36 }
 0x149   : > { %1778 = vmatmul.mubr.f32.vlgmr.msra.gmra.mrb[2].mxu1 %v1471_v14  ;;  %2450 = vmatpush3.bf16.msra.mxu0 %v2449_v62  ;;  %v488_v48 = vunpack.c.h.bf16 %v3712_v11  ;;  %v498_v24 = vunpack.c.h.bf16 %v3715_v32  ;;  %v508_v12 = vunpack.c.h.bf16 %v3721_v33  ;;  %v518_v31 = vunpack.c.h.bf16 %v3724_v56 }
 0x14a   : > { %2452 = vmatprep.subr.bf16.mxu0 %v2451_v61  ;;  %v528_v46 = vunpack.c.h.bf16 %v3727_v4  ;;  %v592_v18 = vadd.f32 %v388_v25, %v378_v22  ;;  %v662_v2 = vadd.f32 %v408_v44, %v398_v5  ;;  %v732_v62 = vadd.f32 %v428_v45, %v418_v51 }
 0x14b   : > { %v802_v26 = vadd.f32 %v448_v43, %v438_v40  ;;  %v872_v3 = vadd.f32 %v468_v23, %v458_v7  ;;  %v942_v60 = vadd.f32 %v488_v48, %v478_v30  ;;  %v1012_v15 = vadd.f32 %v508_v12, %v498_v24 }
 0x14c   : > { %v593_v61 = vrot.slane %v592_v18, 4  ;;  %v1082_v14 = vadd.f32 %v528_v46, %v518_v31  ;;  %v663_v1 = vrot.slane %v662_v2, 4  ;;  %v733_v50 = vrot.slane %v732_v62, 4 }
 0x14d   : > { %2454 = vmatpush3.bf16.msra.mxu0 %v2453_v39  ;;  %v803_v47 = vrot.slane %v802_v26, 4  ;;  %v873_v52 = vrot.slane %v872_v3, 4  ;;  %v943_v10 = vrot.slane %v942_v60, 4  ;;  %v1013_v53 = vrot.slane %v1012_v15, 4 }
 0x14e   : > { %2456 = vmatprep.subr.bf16.mxu0 %v2455_v19  ;;  %v594_v8 = vadd.f32 %v593_v61, %v592_v18  ;;  %v1083_v56 = vrot.slane %v1082_v14, 4  ;;  %v664_v4 = vadd.f32 %v663_v1, %v662_v2  ;;  %v734_v22 = vadd.f32 %v733_v50, %v732_v62 }
 0x14f   : > { %v804_v25 = vadd.f32 %v803_v47, %v802_v26  ;;  %v874_v5 = vadd.f32 %v873_v52, %v872_v3  ;;  %v3945_v39 = vpack.c.bf16 %v3623_v57, %v3621_v37  ;;  %v944_v51 = vadd.f32 %v943_v10, %v942_v60 }
 0x150   : > { %v595_v44 = vrot.slane %v594_v8, 2  ;;  %v1014_v45 = vadd.f32 %v1013_v53, %v1012_v15  ;;  %v1084_v19 = vadd.f32 %v1083_v56, %v1082_v14  ;;  %v3946_v40 = vpack.c.bf16 %v3627_v38, %v3625_v6 }
 0x151   : > { %2458 = vmatpush3.bf16.msra.mxu0 %v3945_v39  ;;  %v665_v43 = vrot.slane %v664_v4, 2  ;;  %v735_v7 = vrot.slane %v734_v22, 2  ;;  %v805_v23 = vrot.slane %v804_v25, 2  ;;  %v875_v30 = vrot.slane %v874_v5, 2 }
 0x152   : > { %2460 = vmatprep.subr.bf16.mxu0 %v3946_v40  ;;  %v596_v1 = vadd.f32 %v595_v44, %v594_v8  ;;  %v945_v50 = vrot.slane %v944_v51, 2  ;;  %v1015_v47 = vrot.slane %v1014_v45, 2  ;;  %v1085_v52 = vrot.slane %v1084_v19, 2  ;;  %v3952_v40 = vld [vmem:[#allocation14_spill] sm:$0xff] }
 0x153   : > { %v666_v48 = vadd.f32 %v665_v43, %v664_v4  ;;  %v736_v24 = vadd.f32 %v735_v7, %v734_v22  ;;  %v806_v37 = vadd.f32 %v805_v23, %v804_v25  ;;  %v876_v57 = vadd.f32 %v875_v30, %v874_v5  ;;  %v3953_v43 = vld [vmem:[#allocation13_spill] sm:$0xff] }
 0x154   : > { %v3947_v53 = vpack.c.bf16 %v3631_v0, %v3629_v42  ;;  %v597_v10 = vrot.slane %v596_v1, 1  ;;  %v946_v56 = vadd.f32 %v945_v50, %v944_v51  ;;  %v1016_v6 = vadd.f32 %v1015_v47, %v1014_v45 }
 0x155   : > { %v1086_v38 = vadd.f32 %v1085_v52, %v1084_v19  ;;  %v3948_v12 = vpack.c.bf16 %v3636_v16, %v3634_v29  ;;  %v667_v8 = vrot.slane %v666_v48, 1  ;;  %v737_v31 = vrot.slane %v736_v24, 1 }
 0x156   : > { %2462 = vmatpush3.bf16.msra.mxu0 %v3947_v53  ;;  %v807_v46 = vrot.slane %v806_v37, 1  ;;  %v877_v18 = vrot.slane %v876_v57, 1  ;;  %v598_v4 = vadd.f32 %v597_v10, %v596_v1  ;;  %v947_v2 = vrot.slane %v946_v56, 1 }
 0x157   : > { %2464 = vmatprep.subr.bf16.mxu0 %v3948_v12  ;;  %v1017_v62 = vrot.slane %v1016_v6, 1  ;;  %v1087_v26 = vrot.slane %v1086_v38, 1  ;;  %v668_v3 = vadd.f32 %v667_v8, %v666_v48  ;;  %v738_v61 = vadd.f32 %v737_v31, %v736_v24 }
 0x158   : > { %v808_v42 = vadd.f32 %v807_v46, %v806_v37  ;;  %v878_v0 = vadd.f32 %v877_v18, %v876_v57  ;;  %v3949_v60 = vpack.c.bf16 %v3650_v63, %v3638_v27  ;;  %v948_v15 = vadd.f32 %v947_v2, %v946_v56 }
 0x159   : > { %v1018_v14 = vadd.f32 %v1017_v62, %v1016_v6  ;;  %v1088_v29 = vadd.f32 %v1087_v26, %v1086_v38  ;;  %v377_v16 = vunpack.c.l.bf16 %v3641_v54  ;;  %v3950_v22 = vpack.c.bf16 %v3654_v58, %v3652_v13 }
 0x15a   : > { %2466 = vmatpush3.bf16.msra.mxu0 %v3949_v60  ;;  %v1486_v25 = vsel %vm1416_vm0, %v668_v3, %v598_v4  ;;  %v387_v5 = vunpack.c.l.bf16 %v3644_v17  ;;  %v397_v39 = vunpack.c.l.bf16 %v3657_v21  ;;  %v407_v44 = vunpack.c.l.bf16 %v3671_v34 }
 0x15b   : > { %2468 = vmatprep.subr.bf16.mxu0 %v3950_v22  ;;  %v1487_v27 = vsel %vm1418_vm1, %v738_v61, %v1486_v25  ;;  %v417_v63 = vunpack.c.l.bf16 %v3681_v35  ;;  %v427_v51 = vunpack.c.l.bf16 %v3684_v9  ;;  %v437_v54 = vunpack.c.l.bf16 %v3687_v49 }
 0x15c   : > { %v1488_v45 = vsel %vm1420_vm2, %v808_v42, %v1487_v27  ;;  %v447_v13 = vunpack.c.l.bf16 %v3697_v55  ;;  %v457_v58 = vunpack.c.l.bf16 %v3700_v20  ;;  %v467_v17 = vunpack.c.l.bf16 %v3703_v28 }
 0x15d   : > { %v3951_v21 = vpack.c.bf16 %v3668_v59, %v3666_v41  ;;  %v1489_v34 = vsel %vm1422_vm3, %v878_v0, %v1488_v45  ;;  %v477_v35 = vunpack.c.l.bf16 %v3709_v36  ;;  %v487_v9 = vunpack.c.l.bf16 %v3712_v11 }
 0x15e   : > { %v497_v49 = vunpack.c.l.bf16 %v3715_v32  ;;  %v1490_v19 = vsel %vm1424_vm4, %v948_v15, %v1489_v34  ;;  %v507_v55 = vunpack.c.l.bf16 %v3721_v33  ;;  %v517_v20 = vunpack.c.l.bf16 %v3952_v40 }
 0x15f   : > { %2470 = vmatpush3.bf16.msra.mxu0 %v3951_v21  ;;  %v527_v28 = vunpack.c.l.bf16 %v3953_v43  ;;  %v1491_v7 = vsel %vm1426_vm5, %v1018_v14, %v1490_v19  ;;  %v585_v41 = vadd.f32 %v387_v5, %v377_v16  ;;  %v655_v59 = vadd.f32 %v407_v44, %v397_v39 }
 0x160   : > { %v725_v23 = vadd.f32 %v427_v51, %v417_v63  ;;  %v1492_v30 = vsel %vm1428_vm6, %v1088_v29, %v1491_v7  ;;  %v795_v36 = vadd.f32 %v447_v13, %v437_v54  ;;  %v865_v1 = vadd.f32 %v467_v17, %v457_v58 }
 0x161   : > { %v935_v11 = vadd.f32 %v487_v9, %v477_v35  ;;  %1847 = vmatprep.mubr.f32.mxu0 %v1492_v30  ;;  %v586_v32 = vrot.slane %v585_v41, 4  ;;  %v656_v50 = vrot.slane %v655_v59, 4  ;;  %v1005_v52 = vadd.f32 %v507_v55, %v497_v49  ;;  %v1854_v30 = vld [vmem:[#allocation7] sm:$0xff] }
 0x162   : > { %v726_v47 = vrot.slane %v725_v23, 4  ;;  %v796_v33 = vrot.slane %v795_v36, 4  ;;  %v866_v48 = vrot.slane %v865_v1, 4  ;;  %v1075_v37 = vadd.f32 %v527_v28, %v517_v20 }
 0x163   : > { %v936_v24 = vrot.slane %v935_v11, 4  ;;  %v587_v57 = vadd.f32 %v586_v32, %v585_v41  ;;  %v657_v53 = vadd.f32 %v656_v50, %v655_v59  ;;  %v1006_v56 = vrot.slane %v1005_v52, 4  ;;  %v1857_v50 = vld [vmem:[#allocation7 + $0x18] sm:$0xff] }
 0x164   : > { %v727_v10 = vadd.f32 %v726_v47, %v725_v23  ;;  %v797_v6 = vadd.f32 %v796_v33, %v795_v36  ;;  %v867_v38 = vadd.f32 %v866_v48, %v865_v1  ;;  %v1076_v8 = vrot.slane %v1075_v37, 4  ;;  %v1855_v36 = vld [vmem:[#allocation7 + $0x8] sm:$0xff]  ;;  %v1856_v1 = vld [vmem:[#allocation7 + $0x10] sm:$0xff] }
 0x165   : > { %v937_v12 = vadd.f32 %v936_v24, %v935_v11  ;;  %v588_v31 = vrot.slane %v587_v57, 2  ;;  %v658_v46 = vrot.slane %v657_v53, 2  ;;  %v1007_v4 = vadd.f32 %v1006_v56, %v1005_v52  ;;  %v1858_v52 = vld [vmem:[#allocation7 + $0x20] sm:$0xff]  ;;  %v1859_v33 = vld [vmem:[#allocation7 + $0x28] sm:$0xff]  ;;  %v1860_v24 = vld [vmem:[#allocation7 + $0x30] sm:$0xff] }
 0x166   : > { %v728_v18 = vrot.slane %v727_v10, 2  ;;  %v798_v2 = vrot.slane %v797_v6, 2  ;;  %v868_v62 = vrot.slane %v867_v38, 2  ;;  %v1077_v3 = vadd.f32 %v1076_v8, %v1075_v37  ;;  %v1861_v37 = vld [vmem:[#allocation7 + $0x38] sm:$0xff]  ;;  %v2076_v8 = vld [vmem:[%s3851_s2] ss:$0 sm:$0xff] }
 0x167   : > { %v938_v26 = vrot.slane %v937_v12, 2  ;;  %v589_v61 = vadd.f32 %v588_v31, %v587_v57  ;;  %v659_v42 = vadd.f32 %v658_v46, %v657_v53  ;;  %v1008_v60 = vrot.slane %v1007_v4, 2  ;;  %v1862_v53 = vld [vmem:[#allocation7 + $0x40] sm:$0xff] }
 0x168   : > { %v729_v0 = vadd.f32 %v728_v18, %v727_v10  ;;  %v799_v15 = vadd.f32 %v798_v2, %v797_v6  ;;  %v869_v14 = vadd.f32 %v868_v62, %v867_v38  ;;  %v1078_v16 = vrot.slane %v1077_v3, 2  ;;  %v1863_v10 = vld [vmem:[#allocation7 + $0x48] sm:$0xff]  ;;  %v1864_v6 = vld [vmem:[#allocation7 + $0x50] sm:$0xff]  ;;  %v1865_v38 = vld [vmem:[#allocation7 + $0x58] sm:$0xff] }
 0x169   : > { %v939_v29 = vadd.f32 %v938_v26, %v937_v12  ;;  %v590_v22 = vrot.slane %v589_v61, 1  ;;  %v660_v25 = vrot.slane %v659_v42, 1  ;;  %v1009_v39 = vadd.f32 %v1008_v60, %v1007_v4  ;;  %v1866_v18 = vld [vmem:[#allocation7 + $0x60] sm:$0xff]  ;;  %v1867_v4 = vld [vmem:[#allocation7 + $0x68] sm:$0xff] }
 0x16a   : > { %v730_v5 = vrot.slane %v729_v0, 1  ;;  %v800_v44 = vrot.slane %v799_v15, 1  ;;  %v870_v27 = vrot.slane %v869_v14, 1  ;;  %v1079_v51 = vadd.f32 %v1078_v16, %v1077_v3 }
 0x16b   : > { %v940_v63 = vrot.slane %v939_v29, 1  ;;  %v591_v54 = vadd.f32 %v590_v22, %v589_v61  ;;  %v661_v45 = vadd.f32 %v660_v25, %v659_v42  ;;  %v1010_v58 = vrot.slane %v1009_v39, 1  ;;  %v1868_v61 = vld [vmem:[#allocation7 + $0x70] sm:$0xff]  ;;  %v1869_v42 = vld [vmem:[#allocation7 + $0x78] sm:$0xff] }
 0x16c   : > { %v731_v13 = vadd.f32 %v730_v5, %v729_v0  ;;  %v801_v17 = vadd.f32 %v800_v44, %v799_v15  ;;  %v871_v21 = vadd.f32 %v870_v27, %v869_v14  ;;  %v1080_v34 = vrot.slane %v1079_v51, 1 }
 0x16d   : > { %v941_v35 = vadd.f32 %v940_v63, %v939_v29  ;;  %v1479_v9 = vsel %vm1416_vm0, %v661_v45, %v591_v54  ;;  %v1011_v49 = vadd.f32 %v1010_v58, %v1009_v39  ;;  %v2733_v11 = vmov 0.0|0.0   ;;  %v2077_v45 = vld [vmem:[%s3853_s4] ss:$0 sm:$0xff] }
 0x16e   : > { %v1480_v19 = vsel %vm1418_vm1, %v731_v13, %v1479_v9  ;;  %v1081_v55 = vadd.f32 %v1080_v34, %v1079_v51  ;;  %2471 = vmatprep.subr.bf16.mxu1 %v2733_v11  ;;  %v2472_v32 = vpack.c.bf16 %v1855_v36, %v1854_v30  ;;  %v2475_v47 = vpack.c.bf16 %v1857_v50, %v1856_v1 }
 0x16f   : > { %v1481_v40 = vsel %vm1420_vm2, %v801_v17, %v1480_v19  ;;  %v2478_v48 = vpack.c.bf16 %v1859_v33, %v1858_v52  ;;  %v2481_v57 = vpack.c.bf16 %v1861_v37, %v1860_v24  ;;  %v2484_v56 = vpack.c.bf16 %v1863_v10, %v1862_v53 }
 0x170   : > { %v1482_v20 = vsel %vm1422_vm3, %v871_v21, %v1481_v40  ;;  %2473 = vmatpush3.bf16.msra.mxu1 %v2472_v32  ;;  %v2487_v12 = vpack.c.bf16 %v1865_v38, %v1864_v6  ;;  %v2490_v62 = vpack.c.bf16 %v1867_v4, %v1866_v18  ;;  %v2493_v0 = vpack.c.bf16 %v1869_v42, %v1868_v61 }
 0x171   : > { %v1483_v43 = vsel %vm1424_vm4, %v941_v35, %v1482_v20  ;;  %2474 = vmatprep.subr.bf16.mxu1 %v2733_v11  ;;  %v2735_v60 = vmov 0.0  }
 0x172   : > { %v1484_v28 = vsel %vm1426_vm5, %v1011_v49, %v1483_v43  ;;  %2308 = vmatprep.mubr.msk.f32.mxu1 %vm2734_vm7, %v2735_v60 }
 0x173   : > { %v1485_v7 = vsel %vm1428_vm6, %v1081_v55, %v1484_v28 }
 0x174   : > { %1848 = vmatmul.mubr.f32.vlgmr.msra.gmra.mrb[4].mxu0 %v1485_v7  ;;  %2476 = vmatpush3.bf16.msra.mxu1 %v2475_v47 }
 0x175   : > { %2477 = vmatprep.subr.bf16.mxu1 %v2733_v11 }
 0x178   : > { %2479 = vmatpush3.bf16.msra.mxu1 %v2478_v48 }
 0x179   : > { %2480 = vmatprep.subr.bf16.mxu1 %v2733_v11 }
 0x17c   : > { %2482 = vmatpush3.bf16.msra.mxu1 %v2481_v57 }
 0x17d   : > { %2483 = vmatprep.subr.bf16.mxu1 %v2733_v11 }
 0x180   : > { %2485 = vmatpush3.bf16.msra.mxu1 %v2484_v56 }
 0x181   : > { %2486 = vmatprep.subr.bf16.mxu1 %v2733_v11 }
 0x184   : > { %2488 = vmatpush3.bf16.msra.mxu1 %v2487_v12 }
 0x185   : > { %2489 = vmatprep.subr.bf16.mxu1 %v2733_v11 }
 0x188   : > { %2491 = vmatpush3.bf16.msra.mxu1 %v2490_v62 }
 0x189   : > { %2492 = vmatprep.subr.bf16.mxu1 %v2733_v11 }
 0x18c   : > { %2494 = vmatpush3.bf16.msra.mxu1 %v2493_v0 }
 0x199   : > { %v2116_v41 = vpop.f32.mrb[0].mxu0 }
 0x19a   : > { %v2117_v59 = vpop.f32.mrb[1].mxu0 }
 0x19b   : > { %v2118_v23 = vadd.f32 %v2117_v59, %v2116_v41 }
 0x19d   : > { %v1570_v31 = vadd.f32 %v2118_v23, %v2076_v8 }
 0x1c1   : > { %v2151_v46 = vpop.f32.mrb[0].mxu1 }
 0x1c2   : > { %v2152_v2 = vpop.f32.mrb[1].mxu1 }
 0x1c3   : > { %v2153_v26 = vadd.f32 %v2152_v2, %v2151_v46 }
 0x1c5   : > { %v1640_v3 = vadd.f32 %v2153_v26, %v1570_v31 }
 0x1f4   : > { %v2186_v15 = vpop.f32.mrb[2].mxu0 }
 0x1f5   : > { %v2187_v14 = vpop.f32.mrb[3].mxu0 }
 0x1f6   : > { %v2188_v29 = vadd.f32 %v2187_v14, %v2186_v15 }
 0x1f8   : > { %v1710_v16 = vadd.f32 %v2188_v29, %v1640_v3 }
 0x21c   : > { %v2221_v22 = vpop.f32.mrb[2].mxu1 }
 0x21d   : > { %v2222_v25 = vpop.f32.mrb[3].mxu1 }
 0x21e   : > { %v2223_v5 = vadd.f32 %v2222_v25, %v2221_v22 }
 0x220   : > { %v1780_v39 = vadd.f32 %v2223_v5, %v1710_v16 }
 0x247   : > { %v2256_v44 = vpop.f32.mrb[4].mxu0 }
 0x248   : > { %v2257_v27 = vpop.f32.mrb[5].mxu0 }
 0x249   : > { %v2258_v63 = vadd.f32 %v2257_v27, %v2256_v44 }
 0x24b   : > { %v1850_v51 = vadd.f32 %v2258_v63, %v1780_v39 }
 0x24d   : > { %v1853_v54 = vmax.f32 %v1850_v51, 0.0 }
 0x24f   : > { %2309 = vmatmul.mubr.f32.vlgmr.msra.gmra.mrb[4].mxu1 %v1853_v54 }
 0x322   : > { %v1943_v13 = vpop.f32.mrb[4].mxu1 }
 0x323   : > { %v1944_v58 = vadd.f32 %v2077_v45, %v1943_v13  ;;  %v2310_v17 = vpop.f32.mrb[5].mxu1 }
 0x325   : > { %v2078_v21 = vmul.f32 -1.442695, %v1944_v58 }
 0x327   : > { %2566 = vpow2.f32 %v2078_v21 }
 0x331   : > { %v2567_v34 = vpop.eup %2566 }
 0x332   : > { %v1950_v35 = vadd.f32 1.0, %v2567_v34 }
 0x334   : > { %2568 = vrcp.f32 %v1950_v35 }
 0x33e   : > { %v2569_v9 = vpop.eup %2568 }
 0x33f   : > { %1953 = vst [vmem:[%s281_s17] sm:$0xff] %v2569_v9 }
 0x340   : > { %2667 = shalt.err (!%p2664_p13)
}
 0x341   : > { %s2668_s13 = scalar_lea.hbm %s3805_s25, 128  ;;  %s2672_s7 = scalar_lea.hbm %s3854_s5, 256 }
 0x342   : > { %p2669_p0 = scmp.ne.s32.totalorder %s3805_s25, %s2668_s13  ;;  %p2673_p2 = scmp.lt.u32.totalorder %s3805_s25, %s3854_s5 }
 0x343   : > { %p2674_p8 = scmp.lt.u32.totalorder %s2672_s7, %s2668_s13  ;;  %p2676_p1 = scmp.lt.u32.totalorder %s2668_s13, %s3805_s25 }
 0x344   : > { %p2670_p12 = pnand %p2669_p0, %p3954_p10 }
 0x345   : > { %p2675_p9 = por %p2674_p8, %p2673_p2 }
 0x346   : > { %p2671_p7 = pneg %p2670_p12 }
 0x347   : > { %p2677_p3 = por %p2676_p1, %p2675_p9 }
 0x349   : > { %p2678_p5 = pnand %p2677_p3, %p2671_p7 }
 0x34b   : > { %2681 = shalt.err (!%p2678_p5)
}
 0x34c   : > { %2507 = dma.vmem_to_hbm [thread:$0]  (%p3954_p10), %s3807_s12, 128, %s3805_s25, %s1955_s26  }
 0x34d PF: > { %s1980_s23 = sand.u32 1, %s2712_s18   ;;  %p3955_p6 = scmp.ne.s32.totalorder %s3882_s6, 0 }
 0x34e   : > { %s1981_s9 = scalar_lea.sflag [#allocation4], %s1980_s23 }
 0x34f   : > { %p2517_p11 = pnand %p2061_p4, %p3955_p6 }
 0x351   : > { %2707 = dma.done.wait (!%p2517_p11), %s1981_s9, 128  }
 0x352   : > { %2709 = vsyncadd (!%p2517_p11), %s1981_s9, 4294967168  ;;  %s3956_s17 = sld [smem:[#allocation12_spill]]  ;;  %p19_p13 = scmp.ge.s32.totalorder %s2792_s24, 4  }
 0x353   : > { %s3957_s18 = smov %s2716_s19  ;;  %s3958_s19 = smov %s2720_s20 }
 0x354   : > { %s3960_s21 = smov %s2792_s24  ;;  %21 = sbr.rel (!%p19_p13) target bundleno = 6 (0x6), region = 93 }
 0x358   : > { %s3959_s20 = smov %s3956_s17 }
 0x35b   :  { %1986 = vsyncpa [#allocation3], 1 }
 0x35c   :  { %1988 = vsyncpa [#allocation3 + $0x1], 1 }
 0x35d   :  { %1989 = vsyncpa [#allocation6], 1 }
 0x35e   :  { %1990 = vsyncpa [#allocation4], 1 }
 0x35f   :  { %1992 = vsyncpa [#allocation4 + $0x1], 1 }

</bundles_post_ra>
